<compile_context>
chip_gen: v5e
topology: v5e:2x2
jax: 0.10.0
libtpu: 0.0.40
codegen_flags: <defaults>
</compile_context>

<pallas_src>
import functools

import jax
import jax.numpy as jnp
from jax import lax
from jax.experimental import pallas as pl
from jax.experimental.pallas import tpu as pltpu


# -----------------------------------------------------------------------------
# Kernel helpers
# -----------------------------------------------------------------------------
def _lstm_cell(gates, c_prev, H):
    """gates: (B, 4H) pre-activations in torch order [i, f, g, o]; c_prev: (B, H) f32."""
    i_g = jax.nn.sigmoid(gates[:, 0 * H:1 * H])
    f_g = jax.nn.sigmoid(gates[:, 1 * H:2 * H])
    g_g = jnp.tanh(gates[:, 2 * H:3 * H])
    o_g = jax.nn.sigmoid(gates[:, 3 * H:4 * H])
    c_new = f_g * c_prev + i_g * g_g
    h_new = o_g * jnp.tanh(c_new)
    return h_new, c_new


def _input_projection(x_ref, wih_ref, b_ref, gx_ref):
    """Hoisted input projection for all timesteps: one big MXU matmul.

    x_ref: (T, B, D_in) f32, wih_ref: (D_in, 8H) bf16, b_ref: (1, 8H) f32,
    gx_ref: VMEM scratch (T*B, 8H) f32 — row t*B+b holds both directions' gates.
    """
    T, B, D_in = x_ref.shape
    x_flat = x_ref[...].reshape(T * B, D_in).astype(jnp.bfloat16)
    gx_ref[...] = (
        jnp.dot(x_flat, wih_ref[...], preferred_element_type=jnp.float32)
        + b_ref[...])


def _bidir_recurrence(gx_ref, whh, T, B, H, out_ref=None):
    """Fused forward+backward recurrence.

    gx_ref: (T*B, 8H) f32 precomputed input gates ([:, :4H]=fwd, [:, 4H:]=bwd)
    whh:    (2H, 8H) bf16 block-diagonal recurrent weights
    out_ref (optional): (T, B, 2H) sequence output; if None, only the pieces
    needed for the classifier head (h_fwd(T-1), h_bwd(T-1)) are returned.
    """
    G = 4 * H
    write_seq = out_ref is not None

    def step(s, carry):
        h_f, h_b, c_f, c_b, hb_last = carry

        # One block-diagonal recurrent matmul per step for BOTH directions.
        h_cat = jnp.concatenate([h_f, h_b], axis=-1).astype(jnp.bfloat16)  # (B, 2H)
        rec = jnp.dot(h_cat, whh, preferred_element_type=jnp.float32)      # (B, 8H)

        row_f = s * B              # forward reads time s
        row_b = (T - 1 - s) * B    # backward reads time T-1-s
        if B % 8 == 0:
            row_f = pl.multiple_of(row_f, 8)
            row_b = pl.multiple_of(row_b, 8)
        g_f = rec[:, :G] + gx_ref[pl.ds(row_f, B), :G]
        g_b = rec[:, G:] + gx_ref[pl.ds(row_b, B), G:]

        h_f_new, c_f_new = _lstm_cell(g_f, c_f, H)
        h_b_new, c_b_new = _lstm_cell(g_b, c_b, H)

        if write_seq:
            out_ref[s, :, :H] = h_f_new.astype(out_ref.dtype)
            out_ref[T - 1 - s, :, H:] = h_b_new.astype(out_ref.dtype)
            hb_last_new = hb_last  # unused in this mode
        else:
            # backward hidden for time T-1 is produced at step s == 0
            hb_last_new = jnp.where(s == 0, h_b_new, hb_last)

        return (h_f_new, h_b_new, c_f_new, c_b_new, hb_last_new)

    z = jnp.zeros((B, H), jnp.float32)
    h_f, _, _, _, hb_last = lax.fori_loop(0, T, step, (z, z, z, z, z))
    return h_f, hb_last


# -----------------------------------------------------------------------------
# Pallas kernels
# -----------------------------------------------------------------------------
def _bilstm_layer_kernel(x_ref, wih_ref, whh_ref, b_ref, out_ref, gx_ref):
    """One bidirectional LSTM layer, full sequence output (T, B, 2H)."""
    T, B, _ = x_ref.shape
    H = out_ref.shape[2] // 2
    _input_projection(x_ref, wih_ref, b_ref, gx_ref)
    _bidir_recurrence(gx_ref, whh_ref[...], T, B, H, out_ref=out_ref)


def _bilstm_head_kernel(x_ref, wih_ref, whh_ref, b_ref,
                        w1_ref, b1_ref, w2_ref, b2_ref, w3_ref, b3_ref,
                        out_ref, gx_ref):
    """Final bidirectional LSTM layer fused with the 3-layer MLP head -> logits."""
    T, B, _ = x_ref.shape
    H = whh_ref.shape[0] // 2
    _input_projection(x_ref, wih_ref, b_ref, gx_ref)
    h_f, h_b = _bidir_recurrence(gx_ref, whh_ref[...], T, B, H, out_ref=None)

    last = jnp.concatenate([h_f, h_b], axis=-1).astype(jnp.bfloat16)  # == out[:, -1, :]
    h1 = jnp.maximum(
        jnp.dot(last, w1_ref[...], preferred_element_type=jnp.float32)
        + b1_ref[...], 0.0)
    h2 = jnp.maximum(
        jnp.dot(h1.astype(jnp.bfloat16), w2_ref[...],
                preferred_element_type=jnp.float32) + b2_ref[...], 0.0)
    out_ref[...] = (
        jnp.dot(h2.astype(jnp.bfloat16), w3_ref[...],
                preferred_element_type=jnp.float32) + b3_ref[...])


# -----------------------------------------------------------------------------
# pallas_call wrappers
# -----------------------------------------------------------------------------
def _pick_batch_block(B):
    # Split the batch into two grid blocks when cleanly possible so the
    # "parallel" grid axis can be sharded across v7x's two TensorCores.
    half = B // 2
    if B % 2 == 0 and half % 8 == 0:
        return half
    return B


def _vmem_limit_bytes(*nbytes):
    need = sum(nbytes)
    return int(min(48 << 20, max(16 << 20, 2 * need + (1 << 20))))


def _run_bilstm_layer(seq, wih, whh, b):
    # TODO(synk): for sequences too long for VMEM, add a time-chunked grid axis with
    # persistent h/c scratch (pl.when init) and reversed index_map for the bwd direction.
    T, B, D_in = seq.shape
    H = whh.shape[0] // 2
    bc = _pick_batch_block(B)
    gx_bytes = T * bc * 8 * H * 4
    io_bytes = 2 * (T * bc * D_in * 4 + T * bc * 2 * H * 4)  # double-buffered blocks
    w_bytes = wih.size * 2 + whh.size * 2 + b.size * 4
    return pl.pallas_call(
        _bilstm_layer_kernel,
        out_shape=jax.ShapeDtypeStruct((T, B, 2 * H), jnp.float32),
        grid=(B // bc,),
        in_specs=[
            pl.BlockSpec((T, bc, D_in), lambda i: (0, i, 0)),
            pl.BlockSpec((D_in, 8 * H), lambda i: (0, 0)),
            pl.BlockSpec((2 * H, 8 * H), lambda i: (0, 0)),
            pl.BlockSpec((1, 8 * H), lambda i: (0, 0)),
        ],
        out_specs=pl.BlockSpec((T, bc, 2 * H), lambda i: (0, i, 0)),
        scratch_shapes=[pltpu.VMEM((T * bc, 8 * H), jnp.float32)],
        compiler_params=pltpu.CompilerParams(
            dimension_semantics=("parallel",),
            vmem_limit_bytes=_vmem_limit_bytes(gx_bytes, io_bytes, w_bytes)),
    )(seq, wih, whh, b)


def _run_bilstm_head(seq, wih, whh, b, w1, b1, w2, b2, w3, b3):
    T, B, D_in = seq.shape
    H = whh.shape[0] // 2
    N1, N2, C = w1.shape[1], w2.shape[1], w3.shape[1]
    bc = _pick_batch_block(B)
    gx_bytes = T * bc * 8 * H * 4
    io_bytes = 2 * (T * bc * D_in * 4 + bc * C * 4)
    w_bytes = ((wih.size + whh.size + w1.size + w2.size + w3.size) * 2
               + (b.size + b1.size + b2.size + b3.size) * 4)
    return pl.pallas_call(
        _bilstm_head_kernel,
        out_shape=jax.ShapeDtypeStruct((B, C), jnp.float32),
        grid=(B // bc,),
        in_specs=[
            pl.BlockSpec((T, bc, D_in), lambda i: (0, i, 0)),
            pl.BlockSpec((D_in, 8 * H), lambda i: (0, 0)),
            pl.BlockSpec((2 * H, 8 * H), lambda i: (0, 0)),
            pl.BlockSpec((1, 8 * H), lambda i: (0, 0)),
            pl.BlockSpec((2 * H, N1), lambda i: (0, 0)),
            pl.BlockSpec((1, N1), lambda i: (0, 0)),
            pl.BlockSpec((N1, N2), lambda i: (0, 0)),
            pl.BlockSpec((1, N2), lambda i: (0, 0)),
            pl.BlockSpec((N2, C), lambda i: (0, 0)),
            pl.BlockSpec((1, C), lambda i: (0, 0)),
        ],
        out_specs=pl.BlockSpec((bc, C), lambda i: (i, 0)),
        scratch_shapes=[pltpu.VMEM((T * bc, 8 * H), jnp.float32)],
        compiler_params=pltpu.CompilerParams(
            dimension_semantics=("parallel",),
            vmem_limit_bytes=_vmem_limit_bytes(gx_bytes, io_bytes, w_bytes)),
    )(seq, wih, whh, b, w1, b1, w2, b2, w3, b3)


# -----------------------------------------------------------------------------
# Model: parameter init (torch-like U(-1/sqrt(H), 1/sqrt(H))) + forward
# -----------------------------------------------------------------------------
def init_params(key, input_size, num_classes, hidden_size, num_layers):
    H = hidden_size
    bound = 1.0 / float(H) ** 0.5

    def unif(k, shape, bnd):
        return jax.random.uniform(k, shape, jnp.float32, -bnd, bnd)

    lstm = []
    for layer in range(num_layers):
        d_in = input_size if layer == 0 else 2 * H
        per_dir = {}
        for direction in ("fwd", "bwd"):
            key, k1, k2, k3, k4 = jax.random.split(key, 5)
            wih = unif(k1, (d_in, 4 * H), bound)         # transposed vs torch
            whh = unif(k2, (H, 4 * H), bound)
            bih = unif(k3, (4 * H,), bound)
            bhh = unif(k4, (4 * H,), bound)
            per_dir[direction] = (wih, whh, bih + bhh)
        # packed layouts: cols [:4H] = fwd gates, [4H:] = bwd gates
        wih_cat = jnp.concatenate([per_dir["fwd"][0], per_dir["bwd"][0]], axis=1)
        whh_cat = jnp.zeros((2 * H, 8 * H), jnp.float32)
        whh_cat = whh_cat.at[:H, :4 * H].set(per_dir["fwd"][1])
        whh_cat = whh_cat.at[H:, 4 * H:].set(per_dir["bwd"][1])
        b_cat = jnp.concatenate([per_dir["fwd"][2], per_dir["bwd"][2]]).reshape(1, 8 * H)
        lstm.append((wih_cat.astype(jnp.bfloat16),
                     whh_cat.astype(jnp.bfloat16),
                     b_cat))

    def lin(k, fan_in, fan_out):
        bnd = 1.0 / float(fan_in) ** 0.5
        k1, k2 = jax.random.split(k)
        return (unif(k1, (fan_in, fan_out), bnd).astype(jnp.bfloat16),
                unif(k2, (1, fan_out), bnd))

    key, k1, k2, k3 = jax.random.split(key, 4)
    mlp = lin(k1, 2 * H, 64) + lin(k2, 64, 32) + lin(k3, 32, num_classes)
    return {"lstm": lstm, "mlp": mlp}


@functools.partial(jax.jit, static_argnames=("num_layers",))
def bilstm_forward(params, x, num_layers):
    """x: (B, T, input_size) batch-first, same as the torch module."""
    seq = jnp.transpose(x, (1, 0, 2)).astype(jnp.float32)  # time-major (T, B, D)
    for layer in range(num_layers - 1):
        wih, whh, b = params["lstm"][layer]
        seq = _run_bilstm_layer(seq, wih, whh, b)           # (T, B, 2H)
    wih, whh, b = params["lstm"][num_layers - 1]
    return _run_bilstm_head(seq, wih, whh, b, *params["mlp"])


# -----------------------------------------------------------------------------
# Demo
# -----------------------------------------------------------------------------
if __name__ == "__main__":
    # Small, sublane-friendly shapes: batch=8, seq=8, input_size=16,
    # hidden_size=32, num_layers=2, num_classes=10.
    B, T = 8, 8
    INPUT_SIZE = 16
    HIDDEN = 32
    NUM_LAYERS = 2
    NUM_CLASSES = 10

    key = jax.random.PRNGKey(0)
    pkey, xkey = jax.random.split(key)

    params = init_params(pkey, INPUT_SIZE, NUM_CLASSES, HIDDEN, NUM_LAYERS)
    x = jax.random.normal(xkey, (B, T, INPUT_SIZE), jnp.float32)

    logits = bilstm_forward(params, x, num_layers=NUM_LAYERS)
    logits = jax.block_until_ready(logits)

    assert logits.shape == (B, NUM_CLASSES), logits.shape
    assert bool(jnp.all(jnp.isfinite(logits)))
    print("KERNEL_OK")
</pallas_src>

<mosaic_0001>
module attributes {stable_mosaic.version = 11 : i64} {
  func.func @_bilstm_layer_kernel(%arg0: i32, %arg1: memref<8x8x16xf32, #tpu.memory_space<vmem>>, %arg2: memref<16x256xbf16, #tpu.memory_space<vmem>>, %arg3: memref<64x256xbf16, #tpu.memory_space<vmem>>, %arg4: memref<1x256xf32, #tpu.memory_space<vmem>>, %arg5: memref<8x8x64xf32, #tpu.memory_space<vmem>>, %arg6: memref<64x256xf32, #tpu.memory_space<vmem>>) attributes {dimension_semantics = [#tpu.dimension_semantics<parallel>], iteration_bounds = array<i64: 1>, scalar_prefetch = 0 : i64, scratch_operands = 1 : i64, tpu.core_type = #tpu.core_type<tc>, window_params = [{transform_indices = @transform_0, window_bounds = array<i64: 8, 8, 16>}, {pipeline_mode = #tpu.pipeline_mode<synchronous>, transform_indices = @transform_1, window_bounds = array<i64: 16, 256>}, {pipeline_mode = #tpu.pipeline_mode<synchronous>, transform_indices = @transform_2, window_bounds = array<i64: 64, 256>}, {pipeline_mode = #tpu.pipeline_mode<synchronous>, transform_indices = @transform_3, window_bounds = array<i64: 1, 256>}, {transform_indices = @transform_4, window_bounds = array<i64: 8, 8, 64>}]} {
    %c0 = arith.constant 0 : index
    %c0_0 = arith.constant 0 : index
    %c0_1 = arith.constant 0 : index
    %0 = vector.load %arg1[%c0, %c0_0, %c0_1] : memref<8x8x16xf32, #tpu.memory_space<vmem>>, vector<8x8x16xf32>
    %1 = vector.shape_cast %0 : vector<8x8x16xf32> to vector<64x16xf32>
    %2 = arith.truncf %1 : vector<64x16xf32> to vector<64x16xbf16>
    %c0_2 = arith.constant 0 : index
    %c0_3 = arith.constant 0 : index
    %3 = vector.load %arg2[%c0_2, %c0_3] : memref<16x256xbf16, #tpu.memory_space<vmem>>, vector<16x256xbf16>
    %cst = arith.constant dense<0.000000e+00> : vector<64x256xf32>
    %4 = tpu.matmul %2, %3, %cst {dimension_numbers = #tpu.dot_dimension_numbers<[1], [0], [0], [1], [0, 0, 1, 1], [], []>} : vector<64x16xbf16>, vector<16x256xbf16>, vector<64x256xf32> -> vector<64x256xf32>
    %c0_4 = arith.constant 0 : index
    %c0_5 = arith.constant 0 : index
    %5 = vector.load %arg4[%c0_4, %c0_5] : memref<1x256xf32, #tpu.memory_space<vmem>>, vector<1x256xf32>
    %6 = vector.broadcast %5 : vector<1x256xf32> to vector<64x256xf32>
    %7 = arith.addf %4, %6 : vector<64x256xf32>
    %c0_6 = arith.constant 0 : index
    %c0_7 = arith.constant 0 : index
    %8 = vector.load %arg6[%c0_6, %c0_7] : memref<64x256xf32, #tpu.memory_space<vmem>>, vector<64x256xf32>
    tpu.vector_store %arg6[%c0_6, %c0_7], %7 {strides = array<i32>} : memref<64x256xf32, #tpu.memory_space<vmem>>, vector<64x256xf32>,
    %c0_8 = arith.constant 0 : index
    %c0_9 = arith.constant 0 : index
    %9 = vector.load %arg3[%c0_8, %c0_9] : memref<64x256xbf16, #tpu.memory_space<vmem>>, vector<64x256xbf16>
    %cst_10 = arith.constant 0.000000e+00 : f32
    %10 = vector.broadcast %cst_10 : f32 to vector<8x32xf32>
    %c0_i32 = arith.constant 0 : i32
    %c8_i32 = arith.constant 8 : i32
    %11 = arith.addi %c0_i32, %c8_i32 : i32
    %c1_i32 = arith.constant 1 : i32
    %12:4 = scf.for %arg7 = %c0_i32 to %11 step %c1_i32 iter_args(%arg8 = %10, %arg9 = %10, %arg10 = %10, %arg11 = %10) -> (vector<8x32xf32>, vector<8x32xf32>, vector<8x32xf32>, vector<8x32xf32>)  : i32 {
      %13 = tpu.concatenate %arg8, %arg9 in 1 : vector<8x32xf32>, vector<8x32xf32> -> vector<8x64xf32>
      %14 = arith.truncf %13 : vector<8x64xf32> to vector<8x64xbf16>
      %cst_12 = arith.constant dense<0.000000e+00> : vector<8x256xf32>
      %15 = tpu.matmul %14, %9, %cst_12 {dimension_numbers = #tpu.dot_dimension_numbers<[1], [0], [0], [1], [0, 0, 1, 1], [], []>} : vector<8x64xbf16>, vector<64x256xbf16>, vector<8x256xf32> -> vector<8x256xf32>
      %c8_i32_13 = arith.constant 8 : i32
      %16 = arith.muli %arg7, %c8_i32_13 : i32
      %c7_i32 = arith.constant 7 : i32
      %17 = arith.subi %c7_i32, %arg7 : i32
      %c8_i32_14 = arith.constant 8 : i32
      %18 = arith.muli %17, %c8_i32_14 : i32
      %19 = tpu.assume_multiple %16, 8 : i32
      %20 = tpu.assume_multiple %18, 8 : i32
      %21 = vector.extract_strided_slice %15 {offsets = [0, 0], sizes = [8, 128], strides = [1, 1]} : vector<8x256xf32> to vector<8x128xf32>
      %22 = arith.index_cast %19 : i32 to index
      %c0_15 = arith.constant 0 : index
      %23 = vector.load %arg6[%22, %c0_15] : memref<64x256xf32, #tpu.memory_space<vmem>>, vector<8x128xf32>
      %24 = arith.addf %21, %23 : vector<8x128xf32>
      %25 = vector.extract_strided_slice %15 {offsets = [0, 128], sizes = [8, 128], strides = [1, 1]} : vector<8x256xf32> to vector<8x128xf32>
      %26 = arith.index_cast %20 : i32 to index
      %c128 = arith.constant 128 : index
      %27 = vector.load %arg6[%26, %c128] : memref<64x256xf32, #tpu.memory_space<vmem>>, vector<8x128xf32>
      %28 = arith.addf %25, %27 : vector<8x128xf32>
      %29 = vector.extract_strided_slice %24 {offsets = [0, 0], sizes = [8, 32], strides = [1, 1]} : vector<8x128xf32> to vector<8x32xf32>
      %30 = arith.negf %29 : vector<8x32xf32>
      %31 = math.exp %30 : vector<8x32xf32>
      %cst_16 = arith.constant 1.000000e+00 : f32
      %32 = vector.broadcast %cst_16 : f32 to vector<8x32xf32>
      %33 = arith.addf %32, %31 : vector<8x32xf32>
      %34 = arith.divf %32, %33 : vector<8x32xf32>
      %35 = vector.extract_strided_slice %24 {offsets = [0, 32], sizes = [8, 32], strides = [1, 1]} : vector<8x128xf32> to vector<8x32xf32>
      %36 = arith.negf %35 : vector<8x32xf32>
      %37 = math.exp %36 : vector<8x32xf32>
      %cst_17 = arith.constant 1.000000e+00 : f32
      %38 = vector.broadcast %cst_17 : f32 to vector<8x32xf32>
      %39 = arith.addf %38, %37 : vector<8x32xf32>
      %40 = arith.divf %38, %39 : vector<8x32xf32>
      %41 = vector.extract_strided_slice %24 {offsets = [0, 64], sizes = [8, 32], strides = [1, 1]} : vector<8x128xf32> to vector<8x32xf32>
      %42 = math.tanh %41 : vector<8x32xf32>
      %43 = vector.extract_strided_slice %24 {offsets = [0, 96], sizes = [8, 32], strides = [1, 1]} : vector<8x128xf32> to vector<8x32xf32>
      %44 = arith.negf %43 : vector<8x32xf32>
      %45 = math.exp %44 : vector<8x32xf32>
      %cst_18 = arith.constant 1.000000e+00 : f32
      %46 = vector.broadcast %cst_18 : f32 to vector<8x32xf32>
      %47 = arith.addf %46, %45 : vector<8x32xf32>
      %48 = arith.divf %46, %47 : vector<8x32xf32>
      %49 = arith.mulf %40, %arg10 : vector<8x32xf32>
      %50 = arith.mulf %34, %42 : vector<8x32xf32>
      %51 = arith.addf %49, %50 : vector<8x32xf32>
      %52 = math.tanh %51 : vector<8x32xf32>
      %53 = arith.mulf %48, %52 : vector<8x32xf32>
      %54 = vector.extract_strided_slice %28 {offsets = [0, 0], sizes = [8, 32], strides = [1, 1]} : vector<8x128xf32> to vector<8x32xf32>
      %55 = arith.negf %54 : vector<8x32xf32>
      %56 = math.exp %55 : vector<8x32xf32>
      %cst_19 = arith.constant 1.000000e+00 : f32
      %57 = vector.broadcast %cst_19 : f32 to vector<8x32xf32>
      %58 = arith.addf %57, %56 : vector<8x32xf32>
      %59 = arith.divf %57, %58 : vector<8x32xf32>
      %60 = vector.extract_strided_slice %28 {offsets = [0, 32], sizes = [8, 32], strides = [1, 1]} : vector<8x128xf32> to vector<8x32xf32>
      %61 = arith.negf %60 : vector<8x32xf32>
      %62 = math.exp %61 : vector<8x32xf32>
      %cst_20 = arith.constant 1.000000e+00 : f32
      %63 = vector.broadcast %cst_20 : f32 to vector<8x32xf32>
      %64 = arith.addf %63, %62 : vector<8x32xf32>
      %65 = arith.divf %63, %64 : vector<8x32xf32>
      %66 = vector.extract_strided_slice %28 {offsets = [0, 64], sizes = [8, 32], strides = [1, 1]} : vector<8x128xf32> to vector<8x32xf32>
      %67 = math.tanh %66 : vector<8x32xf32>
      %68 = vector.extract_strided_slice %28 {offsets = [0, 96], sizes = [8, 32], strides = [1, 1]} : vector<8x128xf32> to vector<8x32xf32>
      %69 = arith.negf %68 : vector<8x32xf32>
      %70 = math.exp %69 : vector<8x32xf32>
      %cst_21 = arith.constant 1.000000e+00 : f32
      %71 = vector.broadcast %cst_21 : f32 to vector<8x32xf32>
      %72 = arith.addf %71, %70 : vector<8x32xf32>
      %73 = arith.divf %71, %72 : vector<8x32xf32>
      %74 = arith.mulf %65, %arg11 : vector<8x32xf32>
      %75 = arith.mulf %59, %67 : vector<8x32xf32>
      %76 = arith.addf %74, %75 : vector<8x32xf32>
      %77 = math.tanh %76 : vector<8x32xf32>
      %78 = arith.mulf %73, %77 : vector<8x32xf32>
      %79 = arith.index_cast %arg7 : i32 to index
      %c0_22 = arith.constant 0 : index
      %c0_23 = arith.constant 0 : index
      %80 = vector.load %arg5[%79, %c0_22, %c0_23] : memref<8x8x64xf32, #tpu.memory_space<vmem>>, vector<1x8x32xf32>
      %81 = vector.shape_cast %80 : vector<1x8x32xf32> to vector<8x32xf32>
      %82 = vector.shape_cast %53 : vector<8x32xf32> to vector<1x8x32xf32>
      tpu.vector_store %arg5[%79, %c0_22, %c0_23], %82 {strides = array<i32>} : memref<8x8x64xf32, #tpu.memory_space<vmem>>, vector<1x8x32xf32>,
      %c7_i32_24 = arith.constant 7 : i32
      %83 = arith.subi %c7_i32_24, %arg7 : i32
      %84 = arith.index_cast %83 : i32 to index
      %c0_25 = arith.constant 0 : index
      %c32 = arith.constant 32 : index
      %85 = vector.load %arg5[%84, %c0_25, %c32] : memref<8x8x64xf32, #tpu.memory_space<vmem>>, vector<1x8x32xf32>
      %86 = vector.shape_cast %85 : vector<1x8x32xf32> to vector<8x32xf32>
      %87 = vector.shape_cast %78 : vector<8x32xf32> to vector<1x8x32xf32>
      tpu.vector_store %arg5[%84, %c0_25, %c32], %87 {strides = array<i32>} : memref<8x8x64xf32, #tpu.memory_space<vmem>>, vector<1x8x32xf32>,
      scf.yield %53, %78, %51, %76 : vector<8x32xf32>, vector<8x32xf32>, vector<8x32xf32>, vector<8x32xf32>
    }
    %c8_i32_11 = arith.constant 8 : i32
    return
  }
  func.func @transform_0(%arg0: i32) -> (i32, i32, i32) {
    %c0_i32 = arith.constant 0 : i32
    %c0_i32_0 = arith.constant 0 : i32
    %c0_i32_1 = arith.constant 0 : i32
    return %c0_i32, %arg0, %c0_i32_0 : i32, i32, i32
  }
  func.func @transform_1(%arg0: i32) -> (i32, i32) {
    %c0_i32 = arith.constant 0 : i32
    %c0_i32_0 = arith.constant 0 : i32
    %c0_i32_1 = arith.constant 0 : i32
    return %c0_i32, %c0_i32_0 : i32, i32
  }
  func.func @transform_2(%arg0: i32) -> (i32, i32) {
    %c0_i32 = arith.constant 0 : i32
    %c0_i32_0 = arith.constant 0 : i32
    %c0_i32_1 = arith.constant 0 : i32
    return %c0_i32, %c0_i32_0 : i32, i32
  }
  func.func @transform_3(%arg0: i32) -> (i32, i32) {
    %c0_i32 = arith.constant 0 : i32
    %c0_i32_0 = arith.constant 0 : i32
    %c0_i32_1 = arith.constant 0 : i32
    return %c0_i32, %c0_i32_0 : i32, i32
  }
  func.func @transform_4(%arg0: i32) -> (i32, i32, i32) {
    %c0_i32 = arith.constant 0 : i32
    %c0_i32_0 = arith.constant 0 : i32
    %c0_i32_1 = arith.constant 0 : i32
    return %c0_i32, %arg0, %c0_i32_0 : i32, i32, i32
  }
}

module attributes {stable_mosaic.version = 11 : i64} {
  func.func @_bilstm_head_kernel(%arg0: i32, %arg1: memref<8x8x64xf32, #tpu.memory_space<vmem>>, %arg2: memref<64x256xbf16, #tpu.memory_space<vmem>>, %arg3: memref<64x256xbf16, #tpu.memory_space<vmem>>, %arg4: memref<1x256xf32, #tpu.memory_space<vmem>>, %arg5: memref<64x64xbf16, #tpu.memory_space<vmem>>, %arg6: memref<1x64xf32, #tpu.memory_space<vmem>>, %arg7: memref<64x32xbf16, #tpu.memory_space<vmem>>, %arg8: memref<1x32xf32, #tpu.memory_space<vmem>>, %arg9: memref<32x10xbf16, #tpu.memory_space<vmem>>, %arg10: memref<1x10xf32, #tpu.memory_space<vmem>>, %arg11: memref<8x10xf32, #tpu.memory_space<vmem>>, %arg12: memref<64x256xf32, #tpu.memory_space<vmem>>) attributes {dimension_semantics = [#tpu.dimension_semantics<parallel>], iteration_bounds = array<i64: 1>, scalar_prefetch = 0 : i64, scratch_operands = 1 : i64, tpu.core_type = #tpu.core_type<tc>, window_params = [{transform_indices = @transform_0, window_bounds = array<i64: 8, 8, 64>}, {pipeline_mode = #tpu.pipeline_mode<synchronous>, transform_indices = @transform_1, window_bounds = array<i64: 64, 256>}, {pipeline_mode = #tpu.pipeline_mode<synchronous>, transform_indices = @transform_2, window_bounds = array<i64: 64, 256>}, {pipeline_mode = #tpu.pipeline_mode<synchronous>, transform_indices = @transform_3, window_bounds = array<i64: 1, 256>}, {pipeline_mode = #tpu.pipeline_mode<synchronous>, transform_indices = @transform_4, window_bounds = array<i64: 64, 64>}, {pipeline_mode = #tpu.pipeline_mode<synchronous>, transform_indices = @transform_5, window_bounds = array<i64: 1, 64>}, {pipeline_mode = #tpu.pipeline_mode<synchronous>, transform_indices = @transform_6, window_bounds = array<i64: 64, 32>}, {pipeline_mode = #tpu.pipeline_mode<synchronous>, transform_indices = @transform_7, window_bounds = array<i64: 1, 32>}, {pipeline_mode = #tpu.pipeline_mode<synchronous>, transform_indices = @transform_8, window_bounds = array<i64: 32, 10>}, {pipeline_mode = #tpu.pipeline_mode<synchronous>, transform_indices = @transform_9, window_bounds = array<i64: 1, 10>}, {transform_indices = @transform_10, window_bounds = array<i64: 8, 10>}]} {
    %c0 = arith.constant 0 : index
    %c0_0 = arith.constant 0 : index
    %c0_1 = arith.constant 0 : index
    %0 = vector.load %arg1[%c0, %c0_0, %c0_1] : memref<8x8x64xf32, #tpu.memory_space<vmem>>, vector<8x8x64xf32>
    %1 = vector.shape_cast %0 : vector<8x8x64xf32> to vector<64x64xf32>
    %2 = arith.truncf %1 : vector<64x64xf32> to vector<64x64xbf16>
    %c0_2 = arith.constant 0 : index
    %c0_3 = arith.constant 0 : index
    %3 = vector.load %arg2[%c0_2, %c0_3] : memref<64x256xbf16, #tpu.memory_space<vmem>>, vector<64x256xbf16>
    %cst = arith.constant dense<0.000000e+00> : vector<64x256xf32>
    %4 = tpu.matmul %2, %3, %cst {dimension_numbers = #tpu.dot_dimension_numbers<[1], [0], [0], [1], [0, 0, 1, 1], [], []>} : vector<64x64xbf16>, vector<64x256xbf16>, vector<64x256xf32> -> vector<64x256xf32>
    %c0_4 = arith.constant 0 : index
    %c0_5 = arith.constant 0 : index
    %5 = vector.load %arg4[%c0_4, %c0_5] : memref<1x256xf32, #tpu.memory_space<vmem>>, vector<1x256xf32>
    %6 = vector.broadcast %5 : vector<1x256xf32> to vector<64x256xf32>
    %7 = arith.addf %4, %6 : vector<64x256xf32>
    %c0_6 = arith.constant 0 : index
    %c0_7 = arith.constant 0 : index
    %8 = vector.load %arg12[%c0_6, %c0_7] : memref<64x256xf32, #tpu.memory_space<vmem>>, vector<64x256xf32>
    tpu.vector_store %arg12[%c0_6, %c0_7], %7 {strides = array<i32>} : memref<64x256xf32, #tpu.memory_space<vmem>>, vector<64x256xf32>,
    %c0_8 = arith.constant 0 : index
    %c0_9 = arith.constant 0 : index
    %9 = vector.load %arg3[%c0_8, %c0_9] : memref<64x256xbf16, #tpu.memory_space<vmem>>, vector<64x256xbf16>
    %cst_10 = arith.constant 0.000000e+00 : f32
    %10 = vector.broadcast %cst_10 : f32 to vector<8x32xf32>
    %c0_i32 = arith.constant 0 : i32
    %c8_i32 = arith.constant 8 : i32
    %11 = arith.addi %c0_i32, %c8_i32 : i32
    %c1_i32 = arith.constant 1 : i32
    %12:5 = scf.for %arg13 = %c0_i32 to %11 step %c1_i32 iter_args(%arg14 = %10, %arg15 = %10, %arg16 = %10, %arg17 = %10, %arg18 = %10) -> (vector<8x32xf32>, vector<8x32xf32>, vector<8x32xf32>, vector<8x32xf32>, vector<8x32xf32>)  : i32 {
      %37 = tpu.concatenate %arg14, %arg15 in 1 : vector<8x32xf32>, vector<8x32xf32> -> vector<8x64xf32>
      %38 = arith.truncf %37 : vector<8x64xf32> to vector<8x64xbf16>
      %cst_31 = arith.constant dense<0.000000e+00> : vector<8x256xf32>
      %39 = tpu.matmul %38, %9, %cst_31 {dimension_numbers = #tpu.dot_dimension_numbers<[1], [0], [0], [1], [0, 0, 1, 1], [], []>} : vector<8x64xbf16>, vector<64x256xbf16>, vector<8x256xf32> -> vector<8x256xf32>
      %c8_i32_32 = arith.constant 8 : i32
      %40 = arith.muli %arg13, %c8_i32_32 : i32
      %c7_i32 = arith.constant 7 : i32
      %41 = arith.subi %c7_i32, %arg13 : i32
      %c8_i32_33 = arith.constant 8 : i32
      %42 = arith.muli %41, %c8_i32_33 : i32
      %43 = tpu.assume_multiple %40, 8 : i32
      %44 = tpu.assume_multiple %42, 8 : i32
      %45 = vector.extract_strided_slice %39 {offsets = [0, 0], sizes = [8, 128], strides = [1, 1]} : vector<8x256xf32> to vector<8x128xf32>
      %46 = arith.index_cast %43 : i32 to index
      %c0_34 = arith.constant 0 : index
      %47 = vector.load %arg12[%46, %c0_34] : memref<64x256xf32, #tpu.memory_space<vmem>>, vector<8x128xf32>
      %48 = arith.addf %45, %47 : vector<8x128xf32>
      %49 = vector.extract_strided_slice %39 {offsets = [0, 128], sizes = [8, 128], strides = [1, 1]} : vector<8x256xf32> to vector<8x128xf32>
      %50 = arith.index_cast %44 : i32 to index
      %c128 = arith.constant 128 : index
      %51 = vector.load %arg12[%50, %c128] : memref<64x256xf32, #tpu.memory_space<vmem>>, vector<8x128xf32>
      %52 = arith.addf %49, %51 : vector<8x128xf32>
      %53 = vector.extract_strided_slice %48 {offsets = [0, 0], sizes = [8, 32], strides = [1, 1]} : vector<8x128xf32> to vector<8x32xf32>
      %54 = arith.negf %53 : vector<8x32xf32>
      %55 = math.exp %54 : vector<8x32xf32>
      %cst_35 = arith.constant 1.000000e+00 : f32
      %56 = vector.broadcast %cst_35 : f32 to vector<8x32xf32>
      %57 = arith.addf %56, %55 : vector<8x32xf32>
      %58 = arith.divf %56, %57 : vector<8x32xf32>
      %59 = vector.extract_strided_slice %48 {offsets = [0, 32], sizes = [8, 32], strides = [1, 1]} : vector<8x128xf32> to vector<8x32xf32>
      %60 = arith.negf %59 : vector<8x32xf32>
      %61 = math.exp %60 : vector<8x32xf32>
      %cst_36 = arith.constant 1.000000e+00 : f32
      %62 = vector.broadcast %cst_36 : f32 to vector<8x32xf32>
      %63 = arith.addf %62, %61 : vector<8x32xf32>
      %64 = arith.divf %62, %63 : vector<8x32xf32>
      %65 = vector.extract_strided_slice %48 {offsets = [0, 64], sizes = [8, 32], strides = [1, 1]} : vector<8x128xf32> to vector<8x32xf32>
      %66 = math.tanh %65 : vector<8x32xf32>
      %67 = vector.extract_strided_slice %48 {offsets = [0, 96], sizes = [8, 32], strides = [1, 1]} : vector<8x128xf32> to vector<8x32xf32>
      %68 = arith.negf %67 : vector<8x32xf32>
      %69 = math.exp %68 : vector<8x32xf32>
      %cst_37 = arith.constant 1.000000e+00 : f32
      %70 = vector.broadcast %cst_37 : f32 to vector<8x32xf32>
      %71 = arith.addf %70, %69 : vector<8x32xf32>
      %72 = arith.divf %70, %71 : vector<8x32xf32>
      %73 = arith.mulf %64, %arg16 : vector<8x32xf32>
      %74 = arith.mulf %58, %66 : vector<8x32xf32>
      %75 = arith.addf %73, %74 : vector<8x32xf32>
      %76 = math.tanh %75 : vector<8x32xf32>
      %77 = arith.mulf %72, %76 : vector<8x32xf32>
      %78 = vector.extract_strided_slice %52 {offsets = [0, 0], sizes = [8, 32], strides = [1, 1]} : vector<8x128xf32> to vector<8x32xf32>
      %79 = arith.negf %78 : vector<8x32xf32>
      %80 = math.exp %79 : vector<8x32xf32>
      %cst_38 = arith.constant 1.000000e+00 : f32
      %81 = vector.broadcast %cst_38 : f32 to vector<8x32xf32>
      %82 = arith.addf %81, %80 : vector<8x32xf32>
      %83 = arith.divf %81, %82 : vector<8x32xf32>
      %84 = vector.extract_strided_slice %52 {offsets = [0, 32], sizes = [8, 32], strides = [1, 1]} : vector<8x128xf32> to vector<8x32xf32>
      %85 = arith.negf %84 : vector<8x32xf32>
      %86 = math.exp %85 : vector<8x32xf32>
      %cst_39 = arith.constant 1.000000e+00 : f32
      %87 = vector.broadcast %cst_39 : f32 to vector<8x32xf32>
      %88 = arith.addf %87, %86 : vector<8x32xf32>
      %89 = arith.divf %87, %88 : vector<8x32xf32>
      %90 = vector.extract_strided_slice %52 {offsets = [0, 64], sizes = [8, 32], strides = [1, 1]} : vector<8x128xf32> to vector<8x32xf32>
      %91 = math.tanh %90 : vector<8x32xf32>
      %92 = vector.extract_strided_slice %52 {offsets = [0, 96], sizes = [8, 32], strides = [1, 1]} : vector<8x128xf32> to vector<8x32xf32>
      %93 = arith.negf %92 : vector<8x32xf32>
      %94 = math.exp %93 : vector<8x32xf32>
      %cst_40 = arith.constant 1.000000e+00 : f32
      %95 = vector.broadcast %cst_40 : f32 to vector<8x32xf32>
      %96 = arith.addf %95, %94 : vector<8x32xf32>
      %97 = arith.divf %95, %96 : vector<8x32xf32>
      %98 = arith.mulf %89, %arg17 : vector<8x32xf32>
      %99 = arith.mulf %83, %91 : vector<8x32xf32>
      %100 = arith.addf %98, %99 : vector<8x32xf32>
      %101 = math.tanh %100 : vector<8x32xf32>
      %102 = arith.mulf %97, %101 : vector<8x32xf32>
      %c0_i32_41 = arith.constant 0 : i32
      %103 = arith.cmpi eq, %arg13, %c0_i32_41 : i32
      %104 = arith.select %103, %102, %arg18 : vector<8x32xf32>
      scf.yield %77, %102, %75, %100, %104 : vector<8x32xf32>, vector<8x32xf32>, vector<8x32xf32>, vector<8x32xf32>, vector<8x32xf32>
    }
    %c8_i32_11 = arith.constant 8 : i32
    %13 = tpu.concatenate %12#0, %12#4 in 1 : vector<8x32xf32>, vector<8x32xf32> -> vector<8x64xf32>
    %14 = arith.truncf %13 : vector<8x64xf32> to vector<8x64xbf16>
    %c0_12 = arith.constant 0 : index
    %c0_13 = arith.constant 0 : index
    %15 = vector.load %arg5[%c0_12, %c0_13] : memref<64x64xbf16, #tpu.memory_space<vmem>>, vector<64x64xbf16>
    %cst_14 = arith.constant dense<0.000000e+00> : vector<8x64xf32>
    %16 = tpu.matmul %14, %15, %cst_14 {dimension_numbers = #tpu.dot_dimension_numbers<[1], [0], [0], [1], [0, 0, 1, 1], [], []>} : vector<8x64xbf16>, vector<64x64xbf16>, vector<8x64xf32> -> vector<8x64xf32>
    %c0_15 = arith.constant 0 : index
    %c0_16 = arith.constant 0 : index
    %17 = vector.load %arg6[%c0_15, %c0_16] : memref<1x64xf32, #tpu.memory_space<vmem>>, vector<1x64xf32>
    %18 = vector.broadcast %17 : vector<1x64xf32> to vector<8x64xf32>
    %19 = arith.addf %16, %18 : vector<8x64xf32>
    %cst_17 = arith.constant 0.000000e+00 : f32
    %20 = vector.broadcast %cst_17 : f32 to vector<8x64xf32>
    %21 = arith.maximumf %19, %20 : vector<8x64xf32>
    %22 = arith.truncf %21 : vector<8x64xf32> to vector<8x64xbf16>
    %c0_18 = arith.constant 0 : index
    %c0_19 = arith.constant 0 : index
    %23 = vector.load %arg7[%c0_18, %c0_19] : memref<64x32xbf16, #tpu.memory_space<vmem>>, vector<64x32xbf16>
    %cst_20 = arith.constant dense<0.000000e+00> : vector<8x32xf32>
    %24 = tpu.matmul %22, %23, %cst_20 {dimension_numbers = #tpu.dot_dimension_numbers<[1], [0], [0], [1], [0, 0, 1, 1], [], []>} : vector<8x64xbf16>, vector<64x32xbf16>, vector<8x32xf32> -> vector<8x32xf32>
    %c0_21 = arith.constant 0 : index
    %c0_22 = arith.constant 0 : index
    %25 = vector.load %arg8[%c0_21, %c0_22] : memref<1x32xf32, #tpu.memory_space<vmem>>, vector<1x32xf32>
    %26 = vector.broadcast %25 : vector<1x32xf32> to vector<8x32xf32>
    %27 = arith.addf %24, %26 : vector<8x32xf32>
    %cst_23 = arith.constant 0.000000e+00 : f32
    %28 = vector.broadcast %cst_23 : f32 to vector<8x32xf32>
    %29 = arith.maximumf %27, %28 : vector<8x32xf32>
    %30 = arith.truncf %29 : vector<8x32xf32> to vector<8x32xbf16>
    %c0_24 = arith.constant 0 : index
    %c0_25 = arith.constant 0 : index
    %31 = vector.load %arg9[%c0_24, %c0_25] : memref<32x10xbf16, #tpu.memory_space<vmem>>, vector<32x10xbf16>
    %cst_26 = arith.constant dense<0.000000e+00> : vector<8x10xf32>
    %32 = tpu.matmul %30, %31, %cst_26 {dimension_numbers = #tpu.dot_dimension_numbers<[1], [0], [0], [1], [0, 0, 1, 1], [], []>} : vector<8x32xbf16>, vector<32x10xbf16>, vector<8x10xf32> -> vector<8x10xf32>
    %c0_27 = arith.constant 0 : index
    %c0_28 = arith.constant 0 : index
    %33 = vector.load %arg10[%c0_27, %c0_28] : memref<1x10xf32, #tpu.memory_space<vmem>>, vector<1x10xf32>
    %34 = vector.broadcast %33 : vector<1x10xf32> to vector<8x10xf32>
    %35 = arith.addf %32, %34 : vector<8x10xf32>
    %c0_29 = arith.constant 0 : index
    %c0_30 = arith.constant 0 : index
    %36 = vector.load %arg11[%c0_29, %c0_30] : memref<8x10xf32, #tpu.memory_space<vmem>>, vector<8x10xf32>
    tpu.vector_store %arg11[%c0_29, %c0_30], %35 {strides = array<i32>} : memref<8x10xf32, #tpu.memory_space<vmem>>, vector<8x10xf32>,
    return
  }
  func.func @transform_0(%arg0: i32) -> (i32, i32, i32) {
    %c0_i32 = arith.constant 0 : i32
    %c0_i32_0 = arith.constant 0 : i32
    %c0_i32_1 = arith.constant 0 : i32
    return %c0_i32, %arg0, %c0_i32_0 : i32, i32, i32
  }
  func.func @transform_1(%arg0: i32) -> (i32, i32) {
    %c0_i32 = arith.constant 0 : i32
    %c0_i32_0 = arith.constant 0 : i32
    %c0_i32_1 = arith.constant 0 : i32
    return %c0_i32, %c0_i32_0 : i32, i32
  }
  func.func @transform_2(%arg0: i32) -> (i32, i32) {
    %c0_i32 = arith.constant 0 : i32
    %c0_i32_0 = arith.constant 0 : i32
    %c0_i32_1 = arith.constant 0 : i32
    return %c0_i32, %c0_i32_0 : i32, i32
  }
  func.func @transform_3(%arg0: i32) -> (i32, i32) {
    %c0_i32 = arith.constant 0 : i32
    %c0_i32_0 = arith.constant 0 : i32
    %c0_i32_1 = arith.constant 0 : i32
    return %c0_i32, %c0_i32_0 : i32, i32
  }
  func.func @transform_4(%arg0: i32) -> (i32, i32) {
    %c0_i32 = arith.constant 0 : i32
    %c0_i32_0 = arith.constant 0 : i32
    %c0_i32_1 = arith.constant 0 : i32
    return %c0_i32, %c0_i32_0 : i32, i32
  }
  func.func @transform_5(%arg0: i32) -> (i32, i32) {
    %c0_i32 = arith.constant 0 : i32
    %c0_i32_0 = arith.constant 0 : i32
    %c0_i32_1 = arith.constant 0 : i32
    return %c0_i32, %c0_i32_0 : i32, i32
  }
  func.func @transform_6(%arg0: i32) -> (i32, i32) {
    %c0_i32 = arith.constant 0 : i32
    %c0_i32_0 = arith.constant 0 : i32
    %c0_i32_1 = arith.constant 0 : i32
    return %c0_i32, %c0_i32_0 : i32, i32
  }
  func.func @transform_7(%arg0: i32) -> (i32, i32) {
    %c0_i32 = arith.constant 0 : i32
    %c0_i32_0 = arith.constant 0 : i32
    %c0_i32_1 = arith.constant 0 : i32
    return %c0_i32, %c0_i32_0 : i32, i32
  }
  func.func @transform_8(%arg0: i32) -> (i32, i32) {
    %c0_i32 = arith.constant 0 : i32
    %c0_i32_0 = arith.constant 0 : i32
    %c0_i32_1 = arith.constant 0 : i32
    return %c0_i32, %c0_i32_0 : i32, i32
  }
  func.func @transform_9(%arg0: i32) -> (i32, i32) {
    %c0_i32 = arith.constant 0 : i32
    %c0_i32_0 = arith.constant 0 : i32
    %c0_i32_1 = arith.constant 0 : i32
    return %c0_i32, %c0_i32_0 : i32, i32
  }
  func.func @transform_10(%arg0: i32) -> (i32, i32) {
    %c0_i32 = arith.constant 0 : i32
    %c0_i32_0 = arith.constant 0 : i32
    return %arg0, %c0_i32 : i32, i32
  }
}

</mosaic_0001>

<bundles_post_ra>
// kernel: bilstm_forward.3
= control target key start
LH: loop header
LB: loop body
LE: loop exit
PB: predicated region body
PF: predicated region fallthrough
CT: control target
= control target key end

     0   :  { %15 = vsyncpa [#allocation4], 0  ;;  %s1398_s0 = inlined_call_operand.vmem [shape: f32[8,8,64], index: 0, kind: input, shape index: {}]   ;;  %s1399_s1 = inlined_call_operand.vmem [shape: bf16[64,256], index: 1, kind: input, shape index: {}]   ;;  %s1400_s2 = inlined_call_operand.hbm [shape: bf16[64,256], index: 2, kind: input, shape index: {}]   ;;  %s1401_s3 = inlined_call_operand.hbm [shape: f32[1,256], index: 3, kind: input, shape index: {}]   ;;  %s1402_s4 = inlined_call_operand.vmem [shape: bf16[64,64], index: 4, kind: input, shape index: {}]   ;;  %s1403_s5 = inlined_call_operand.hbm [shape: f32[1,64], index: 5, kind: input, shape index: {}]   ;;  %s1404_s6 = inlined_call_operand.vmem [shape: bf16[64,32], index: 6, kind: input, shape index: {}]   ;;  %s1405_s7 = inlined_call_operand.hbm [shape: f32[1,32], index: 7, kind: input, shape index: {}]   ;;  %s1406_s8 = inlined_call_operand.vmem [shape: bf16[32,10], index: 8, kind: input, shape index: {}]   ;;  %s1407_s9 = inlined_call_operand.hbm [shape: f32[1,10], index: 9, kind: input, shape index: {}]   ;;  %s1408_s10 = inlined_call_operand.hbm [shape: f32[8,10], index: 10, kind: output, shape index: {}]  }
   0x1   :  { %16 = vsyncpa [#allocation7], 0 }
   0x2   :  { %17 = vsyncpa [#allocation10], 0  ;;  %s41_s15 = sshll.u32 %s1401_s3, 4  ;;  %s42_s15 = int_to_ptr.hbm [resolvable:$true] %s41_s15 }
   0x3   :  { %18 = vsyncpa [#allocation5], 0  ;;  %s1095_s16 = smov [#allocation6]   ;;  %s67_s20 = sshll.u32 %s1405_s7, 4  ;;  %s68_s20 = int_to_ptr.hbm [resolvable:$true] %s67_s20 }
   0x4   :  { %s43_s17 = sshll.u32 %s1095_s16, 4  ;;  %s1096_s21 = smov [#allocation9]   ;;  %s44_s17 = int_to_ptr.vmem [resolvable:$true] %s43_s17 }
   0x5   :  { %46 = dma.hbm_to_vmem [thread:$0]  %s42_s15, 32, %s44_s17, [#allocation7]  }
   0x6   :  { %s69_s22 = sshll.u32 %s1096_s21, 4  ;;  %s27_s25 = sshll.u32 %s1400_s2, 4  ;;  %s70_s22 = int_to_ptr.vmem [resolvable:$true] %s69_s22  ;;  %s28_s25 = int_to_ptr.hbm [resolvable:$true] %s27_s25 }
   0x7   :  { %72 = dma.hbm_to_vmem [thread:$0]  %s68_s20, 16, %s70_s22, [#allocation10]  }
   0x8   :  { %s1097_s3 = smov [#allocation3]   ;;  %s54_s29 = sshll.u32 %s1403_s5, 4  ;;  %s55_s29 = int_to_ptr.hbm [resolvable:$true] %s54_s29 }
   0x9   :  { %s29_s26 = sshll.u32 %s1097_s3, 4  ;;  %s1098_s30 = smov 128   ;;  %s30_s26 = int_to_ptr.vmem [resolvable:$true] %s29_s26 }
   0xa   :  { %s1099_s7 = smov 8   ;;  %s1100_s11 = smov [#allocation8]  }
   0xb   :  { %35 = dma.hbm_to_vmem [thread:$0]  %s28_s25, 1024, %s30_s26, [#allocation4], %s1098_s30, %s1098_s30, %s1099_s7  }
   0xc   :  { %s56_s12 = sshll.u32 %s1100_s11, 4  ;;  %s80_s2 = sshll.u32 %s1407_s9, 4  ;;  %s57_s12 = int_to_ptr.vmem [resolvable:$true] %s56_s12  ;;  %s81_s2 = int_to_ptr.hbm [resolvable:$true] %s80_s2 }
   0xd   :  { %59 = dma.hbm_to_vmem [thread:$0]  %s55_s29, 16, %s57_s12, [#allocation7]  }
   0xe   :  { %s1101_s15 = smov [#allocation11]  }
   0xf   :  { %s82_s16 = sshll.u32 %s1101_s15, 4  ;;  %s83_s16 = int_to_ptr.vmem [resolvable:$true] %s82_s16 }
  0x10   :  { %85 = dma.hbm_to_vmem [thread:$0]  %s81_s2, 16, %s83_s16, [#allocation10]  }
  0x11   :  { %1063 = dma.done.wait [#allocation4], 1024  }
  0x12   :  { %1064 = vsyncadd [#allocation4], 4294966272 }
  0x13   :  { %1065 = dma.done.wait [#allocation7], 48  }
  0x14   :  { %1066 = vsyncadd [#allocation7], 4294967248 }
  0x15   :  { %1067 = dma.done.wait [#allocation10], 32  }
  0x16   :  { %1068 = vsyncadd [#allocation10], 4294967264  ;;  %v1177_v0 = vld [vmem:[#allocation3 + $0x4] sm:$0xf]  ;;  %v1179_v1 = vld [vmem:[#allocation3] sm:$0xf] }
  0x17   :  { %v1181_v2 = vld [vmem:[#allocation3 + $0x8] sm:$0xf0]  ;;  %v1183_v3 = vld [vmem:[#allocation3 + $0x4] sm:$0xf0]  ;;  %v1185_v4 = vld [vmem:[#allocation3 + $0x14] sm:$0xf] }
  0x18   :  { %v1187_v5 = vld [vmem:[#allocation3 + $0x10] sm:$0xf]  ;;  %v1189_v6 = vld [vmem:[#allocation3 + $0x18] sm:$0xf0]  ;;  %v1191_v7 = vld [vmem:[#allocation3 + $0x14] sm:$0xf0] }
  0x19   :  { %v1193_v8 = vld [vmem:[#allocation3 + $0x24] sm:$0xf]  ;;  %v1195_v9 = vld [vmem:[#allocation3 + $0x20] sm:$0xf]  ;;  %v1197_v10 = vld [vmem:[#allocation3 + $0x28] sm:$0xf0] }
  0x1a   :  { %v1199_v11 = vld [vmem:[#allocation3 + $0x24] sm:$0xf0]  ;;  %v1201_v12 = vld [vmem:[#allocation3 + $0x34] sm:$0xf]  ;;  %v1203_v13 = vld [vmem:[#allocation3 + $0x30] sm:$0xf] }
  0x1b   :  { %v1205_v14 = vld [vmem:[#allocation3 + $0x38] sm:$0xf0]  ;;  %v1207_v15 = vld [vmem:[#allocation3 + $0x34] sm:$0xf0]  ;;  %v681_v16 = vld [vmem:[%s1399_s1 + $0x30] sm:$0xf] }
  0x1c   :  { %v787_v17 = vld [vmem:[%s1399_s1 + $0x34] sm:$0xf0]  ;;  %v786_v19 = vld [vmem:[%s1399_s1 + $0x34] sm:$0xf]  ;;  %v683_v20 = vld [vmem:[%s1399_s1 + $0x38] sm:$0xf0] }
  0x1d   :  { %v682_v18 = vor.u32 %v787_v17, %v681_v16  ;;  %v673_v21 = vld [vmem:[%s1399_s1 + $0x20] sm:$0xf]  ;;  %v686_v22 = vor.u32 %v786_v19, %v683_v20  ;;  %v785_v23 = vld [vmem:[%s1399_s1 + $0x24] sm:$0xf0]  ;;  %v784_v24 = vld [vmem:[%s1399_s1 + $0x24] sm:$0xf] }
  0x1e   :  { %v675_v25 = vld [vmem:[%s1399_s1 + $0x28] sm:$0xf0]  ;;  %v674_v26 = vor.u32 %v785_v23, %v673_v21  ;;  %v665_v28 = vld [vmem:[%s1399_s1 + $0x10] sm:$0xf]  ;;  %v783_v29 = vld [vmem:[%s1399_s1 + $0x14] sm:$0xf0] }
  0x1f   :  { %190 = vmatpush.bf16.msra.mxu0 %v682_v18  ;;  %808 = vmatpush.bf16.msra.mxu2 %v682_v18  ;;  %v678_v27 = vor.u32 %v784_v24, %v675_v25  ;;  %v782_v30 = vld [vmem:[%s1399_s1 + $0x14] sm:$0xf]  ;;  %v667_v31 = vld [vmem:[%s1399_s1 + $0x18] sm:$0xf0]  ;;  %v666_v32 = vor.u32 %v783_v29, %v665_v28  ;;  %v657_v34 = vld [vmem:[%s1399_s1] sm:$0xf] }
  0x20   :  { %219 = vmatpush.bf16.msra.mxu1 %v686_v22  ;;  %812 = vmatpush.bf16.msra.mxu3 %v686_v22  ;;  %v670_v33 = vor.u32 %v782_v30, %v667_v31  ;;  %v781_v35 = vld [vmem:[%s1399_s1 + $0x4] sm:$0xf0]  ;;  %v780_v36 = vld [vmem:[%s1399_s1 + $0x4] sm:$0xf]  ;;  %v659_v37 = vld [vmem:[%s1399_s1 + $0x8] sm:$0xf0] }
  0x21   :  { %v107_v38 = vld [vmem:[%s1398_s0] sm:$0xff]  ;;  %v658_v39 = vor.u32 %v781_v35, %v657_v34  ;;  %v108_v40 = vld [vmem:[%s1398_s0 + $0x8] sm:$0xff]  ;;  %v662_v43 = vor.u32 %v780_v36, %v659_v37  ;;  %vm173_vm0 = vcmask 523264   ;;  %v109_v46 = vld [vmem:[%s1398_s0 + $0x10] sm:$0xff] }
  0x22   :  { %v111_v41 = vld [vmem:[%s1398_s0 + $0x20] sm:$0xff]  ;;  %v112_v42 = vld [vmem:[%s1398_s0 + $0x28] sm:$0xff]  ;;  %v115_v44 = vpack.c.bf16 %v108_v40, %v107_v38  ;;  %v110_v47 = vld [vmem:[%s1398_s0 + $0x18] sm:$0xff]  ;;  %v1291_v40 = vmov 0.0  }
  0x23   :  { %191 = vmatpush.bf16.msra.mxu0 %v674_v26  ;;  %809 = vmatpush.bf16.msra.mxu2 %v674_v26  ;;  %v117_v45 = vpack.c.bf16 %v112_v42, %v111_v41  ;;  %v113_v48 = vld [vmem:[%s1398_s0 + $0x30] sm:$0xff]  ;;  %v114_v49 = vld [vmem:[%s1398_s0 + $0x38] sm:$0xff]  ;;  %v116_v50 = vpack.c.bf16 %v110_v47, %v109_v46  ;;  %v127_v52 = vld [vmem:[#allocation6] sm:$0x3]  ;;  %v1293_v41 = vmov 0.0   ;;  %v1295_v42 = vmov 0.0  }
  0x24   :  { %220 = vmatpush.bf16.msra.mxu1 %v678_v27  ;;  %813 = vmatpush.bf16.msra.mxu3 %v678_v27  ;;  %v118_v51 = vpack.c.bf16 %v114_v49, %v113_v48  ;;  %v129_v53 = vperm.slane %v127_v52, 0  ;;  %v130_v54 = vperm.slane %v127_v52, 1  ;;  %s1299_s0 = smov 0  }
  0x27   :  { %192 = vmatpush.bf16.msra.mxu0 %v666_v32  ;;  %810 = vmatpush.bf16.msra.mxu2 %v666_v32 }
  0x28   :  { %221 = vmatpush.bf16.msra.mxu1 %v670_v33  ;;  %814 = vmatpush.bf16.msra.mxu3 %v670_v33 }
  0x2b   :  { %193 = vmatpush.bf16.msra.mxu0 %v658_v39  ;;  %811 = vmatpush.bf16.msra.mxu2 %v658_v39  ;;  %v1289_v39 = vmov 0.0  }
  0x2c   :  { %222 = vmatpush.bf16.msra.mxu1 %v662_v43  ;;  %815 = vmatpush.bf16.msra.mxu3 %v662_v43  ;;  %v1297_v43 = vmov 0.0  }
  0x2e   :  { %687 = vmatmul.msk.bf16.vlgmr.msra.gmra.mxu0 %vm173_vm0, %v115_v44  ;;  %689 = vmatmul.msk.bf16.vlgmr.msra.gmra.mxu2 %vm173_vm0, %v117_v45 }
  0x2f   :  { %691 = vmatmul.msk.bf16.vlgmr.msra.gmra.mxu1 %vm173_vm0, %v115_v44  ;;  %693 = vmatmul.msk.bf16.vlgmr.msra.gmra.mxu3 %vm173_vm0, %v117_v45 }
  0x3e   :  { %688 = vmatmul.msk.bf16.gmra.mxu0 %vm173_vm0, %v116_v50  ;;  %690 = vmatmul.msk.bf16.gmra.mxu2 %vm173_vm0, %v118_v51 }
  0x3f   :  { %692 = vmatmul.msk.bf16.gmra.mxu1 %vm173_vm0, %v116_v50  ;;  %694 = vmatmul.msk.bf16.gmra.mxu3 %vm173_vm0, %v118_v51 }
  0xab   :  { %v195_v55 = vpop.f32.mrf.mxu0 }
  0xac   :  { %v196_v56 = vadd.f32 %v195_v55, %v129_v53  ;;  %v224_v57 = vpop.f32.mrf.mxu1 }
  0xad   :  { %v225_v58 = vadd.f32 %v224_v57, %v130_v54 }
  0xae   :  { %244 = vst [vmem:[#allocation2] sm:$0xff] %v196_v56 }
  0xaf   :  { %245 = vst [vmem:[#allocation2 + $0x8] sm:$0xff] %v225_v58 }
  0xb1   :  { %v205_v59 = vpop.f32.mrf.mxu2 }
  0xb2   :  { %v206_v60 = vadd.f32 %v205_v59, %v129_v53  ;;  %v234_v61 = vpop.f32.mrf.mxu3 }
  0xb3   :  { %v235_v62 = vadd.f32 %v234_v61, %v130_v54  ;;  %v197_v63 = vpop.f32.mrf.mxu0 }
  0xb4   :  { %252 = vst [vmem:[#allocation2 + $0x40] sm:$0xff] %v206_v60  ;;  %v198_v16 = vadd.f32 %v197_v63, %v129_v53  ;;  %v226_v17 = vpop.f32.mrf.mxu1 }
  0xb5   :  { %253 = vst [vmem:[#allocation2 + $0x48] sm:$0xff] %v235_v62  ;;  %v227_v18 = vadd.f32 %v226_v17, %v130_v54 }
  0xb6   :  { %246 = vst [vmem:[#allocation2 + $0x10] sm:$0xff] %v198_v16 }
  0xb7   :  { %247 = vst [vmem:[#allocation2 + $0x18] sm:$0xff] %v227_v18 }
  0xb9   :  { %v207_v19 = vpop.f32.mrf.mxu2 }
  0xba   :  { %v208_v20 = vadd.f32 %v207_v19, %v129_v53  ;;  %v236_v21 = vpop.f32.mrf.mxu3 }
  0xbb   :  { %v237_v22 = vadd.f32 %v236_v21, %v130_v54  ;;  %v200_v23 = vpop.f32.mrf.mxu0 }
  0xbc   :  { %254 = vst [vmem:[#allocation2 + $0x50] sm:$0xff] %v208_v20  ;;  %v201_v24 = vadd.f32 %v200_v23, %v129_v53  ;;  %v229_v25 = vpop.f32.mrf.mxu1 }
  0xbd   :  { %255 = vst [vmem:[#allocation2 + $0x58] sm:$0xff] %v237_v22  ;;  %v230_v26 = vadd.f32 %v229_v25, %v130_v54 }
  0xbe   :  { %248 = vst [vmem:[#allocation2 + $0x20] sm:$0xff] %v201_v24 }
  0xbf   :  { %249 = vst [vmem:[#allocation2 + $0x28] sm:$0xff] %v230_v26 }
  0xc1   :  { %v210_v27 = vpop.f32.mrf.mxu2 }
  0xc2   :  { %v211_v28 = vadd.f32 %v210_v27, %v129_v53  ;;  %v239_v29 = vpop.f32.mrf.mxu3 }
  0xc3   :  { %v240_v30 = vadd.f32 %v239_v29, %v130_v54  ;;  %v202_v31 = vpop.f32.mrf.mxu0 }
  0xc4   :  { %256 = vst [vmem:[#allocation2 + $0x60] sm:$0xff] %v211_v28  ;;  %v203_v32 = vadd.f32 %v202_v31, %v129_v53  ;;  %v231_v33 = vpop.f32.mrf.mxu1 }
  0xc5   :  { %257 = vst [vmem:[#allocation2 + $0x68] sm:$0xff] %v240_v30  ;;  %v232_v34 = vadd.f32 %v231_v33, %v130_v54 }
  0xc6   :  { %250 = vst [vmem:[#allocation2 + $0x30] sm:$0xff] %v203_v32 }
  0xc7   :  { %251 = vst [vmem:[#allocation2 + $0x38] sm:$0xff] %v232_v34 }
  0xc9   :  { %v212_v35 = vpop.f32.mrf.mxu2 }
  0xca   :  { %v213_v36 = vadd.f32 %v212_v35, %v129_v53  ;;  %v241_v37 = vpop.f32.mrf.mxu3 }
  0xcb   :  { %v242_v38 = vadd.f32 %v241_v37, %v130_v54 }
  0xcc   :  { %258 = vst [vmem:[#allocation2 + $0x70] sm:$0xff] %v213_v36 }
  0xcd   :  { %259 = vst [vmem:[#allocation2 + $0x78] sm:$0xff] %v242_v38 }
  0xce LB: > { %v722_v44 = vor.u32 %v1207_v15, %v1203_v13  ;;  %v726_v45 = vor.u32 %v1201_v12, %v1205_v14  ;;  %s1102_s2 = smov 32   ;;  %s1103_s15 = smov 64   ;;  %v714_v46 = vor.u32 %v1199_v11, %v1195_v9  ;;  %v718_v47 = vor.u32 %v1193_v8, %v1197_v10  ;;  %s1093_s0 = sphi %s1299_s0, %s273_s0   ;;  %v1089_v43 = vphi %v1297_v43, %v1410_v43   ;;  %v1085_v42 = vphi %v1295_v42, %v449_v42   ;;  %v1081_v41 = vphi %v1293_v41, %v406_v41   ;;  %v1077_v40 = vphi %v1291_v40, %v443_v40   ;;  %v1073_v39 = vphi %v1289_v39, %v1409_v39  }
  0xcf   : > { %280 = vrot.lane.b32.xlu0 %v1089_v43, %s1102_s2  ;;  %v706_v48 = vor.u32 %v1191_v7, %v1187_v5  ;;  %v710_v49 = vor.u32 %v1185_v4, %v1189_v6  ;;  %v698_v50 = vor.u32 %v1183_v3, %v1179_v1  ;;  %v702_v51 = vor.u32 %v1177_v0, %v1181_v2  ;;  %s360_s16 = ssub.s32 7, %s1093_s0  ;;  %s729_s18 = sshll.u32 %s1093_s0, 3 }
  0xd0   : > { %337 = vmatpush.bf16.msra.mxu0 %v722_v44  ;;  %350 = vmatpush.bf16.msra.mxu1 %v726_v45  ;;  %vm287_vm1 = vcmask 261120   ;;  %s730_s5 = sshll.u32 %s360_s16, 3  ;;  %s362_s19 = sshra.s32 %s729_s18, 3 }
  0xd1   : > { %s369_s9 = sshra.s32 %s730_s5, 3  ;;  %s796_s21 = sshll.u32 %s362_s19, 4 }
  0xd2   : > { %s797_s17 = sshll.u32 %s369_s9, 4  ;;  %s366_s22 = scalar_lea.vmem [#allocation2], %s796_s21 }
  0xd3   : > { %s373_s20 = scalar_lea.vmem [#allocation2], %s797_s17  ;;  %p450_p0 = scmp.eq.s32.totalorder %s1093_s0, 0 }
  0xd4   : > { %338 = vmatpush.bf16.msra.mxu0 %v714_v46  ;;  %351 = vmatpush.bf16.msra.mxu1 %v718_v47  ;;  %v374_v56 = vld [vmem:[%s373_s20 + $0x8] sm:$0xff]  ;;  %v367_v60 = vld [vmem:[%s366_s22] sm:$0xff]  ;;  %s273_s0 = sadd.s32 1, %s1093_s0  }
  0xd5   : > { %s451_s23 = scalar_select %p450_p0, 1, 0 }
  0xd6   : > { %p270_p1 = scmp.ge.s32.totalorder %s273_s0, 8  }
  0xd7   : > { %284 = vrot.lane.b32.xlu0 %v1085_v42, %s1103_s15  ;;  %s1104_s3 = smov (%p270_p1), 32   ;;  %s1105_s26 = smov (%p270_p1), 64   ;;  %v798_v0 = vld [vmem:[%s1402_s4] sm:$0xff] (%p270_p1)  ;;  %v805_v1 = vld [vmem:[%s1404_s6 + $0x18] sm:$0xff] (%p270_p1)  ;;  %v804_v2 = vld [vmem:[%s1404_s6 + $0x10] sm:$0xff] (%p270_p1)  ;;  %vm610_vm11 = vcmask (%p270_p1), 80896  }
  0xd8   : > { %339 = vmatpush.bf16.msra.mxu0 %v706_v48  ;;  %352 = vmatpush.bf16.msra.mxu1 %v710_v49  ;;  %v803_v7 = vld [vmem:[%s1404_s6 + $0x8] sm:$0xff] (%p270_p1)  ;;  %v802_v8 = vld [vmem:[%s1404_s6] sm:$0xff] (%p270_p1)  ;;  %s1106_s6 = smov (%p270_p1), [#allocation12]   ;;  %s619_s21 = sshll.u32 (%p270_p1), %s1408_s10, 4  ;;  %s620_s21 = int_to_ptr.hbm [resolvable:$true] %s619_s21 }
  0xd9   :  { %v892_v9 = vld [vmem:[#allocation8] ss:$0 sm:$0xff] (%p270_p1)  ;;  %v807_v15 = vld [vmem:[%s1406_s8 + $0x8] sm:$0xff] (%p270_p1)  ;;  %s617_s18 = sshll.u32 (%p270_p1), %s1106_s6, 4  ;;  %s618_s18 = int_to_ptr.vmem [resolvable:$true] %s617_s18 }
  0xda   :  { %603 = vmatpush.bf16.msra.mxu2 (%p270_p1), %v807_v15 }
  0xdc   : > { %340 = vmatpush.bf16.msra.mxu0 %v698_v50  ;;  %353 = vmatpush.bf16.msra.mxu1 %v702_v51 }
 0x141   : > { %v281_v52 = vpop.permute.xlu0 %280 }
 0x149   : > { %v285_v53 = vpop.permute.xlu0 %284 }
 0x14a   : > { %v288_v54 = vsel %vm287_vm1, %v281_v52, %v285_v53 }
 0x14b   : > { %v289_v55 = vpack.c.bf16 %v288_v54, %v288_v54 }
 0x14d   : > { %727 = vmatmul.msk.bf16.vlgmr.msra.gmra.mxu0 %vm173_vm0, %v289_v55  ;;  %728 = vmatmul.msk.bf16.vlgmr.msra.gmra.mxu1 %vm173_vm0, %v289_v55 }
 0x14e   :  { %563 = vmatpush.bf16.msra.mxu1 (%p270_p1), %v805_v1 }
 0x152   :  { %564 = vmatpush.bf16.msra.mxu1 (%p270_p1), %v804_v2 }
 0x156   :  { %565 = vmatpush.bf16.msra.mxu1 (%p270_p1), %v803_v7 }
 0x15a   :  { %566 = vmatpush.bf16.msra.mxu1 (%p270_p1), %v802_v8 }
 0x1ca   : > { %v342_v57 = vpop.f32.mrf.mxu0  ;;  %v355_v58 = vpop.f32.mrf.mxu1 }
 0x1cb   : > { %v375_v59 = vadd.f32 %v374_v56, %v355_v58  ;;  %v368_v61 = vadd.f32 %v367_v60, %v342_v57  ;;  %v452_v57 = vstv %s451_s23 }
 0x1cc   : > { %vm453_vm10 = vcmp.eq.s32.totalorder %v452_v57, 1 }
 0x1cd   : > { %876 = vtanh.f32 %v375_v59  ;;  %v736_v18 = vmul.f32 -1.442695, %v375_v59  ;;  %v735_v19 = vmul.f32 -1.442695, %v368_v61 }
 0x1ce   : > { %878 = vtanh.f32 %v368_v61 }
 0x1cf   : > { %880 = vpow2.f32 %v736_v18 }
 0x1d0   : > { %882 = vpow2.f32 %v735_v19 }
 0x1d2   : > { %v344_v62 = vpop.f32.mrf.mxu0  ;;  %v357_v63 = vpop.f32.mrf.mxu1 }
 0x1d3   : > { %v877_v16 = vpop.eup %876  ;;  %v801_v62 = vld [vmem:[%s1402_s4 + $0x18] sm:$0xff] (%p270_p1)  ;;  %v800_v63 = vld [vmem:[%s1402_s4 + $0x10] sm:$0xff] (%p270_p1) }
 0x1d4   : > { %435 = vrot.lane.b32.xlu1 %v877_v16, %s1103_s15  ;;  %v879_v17 = vpop.eup %878  ;;  %509 = vmatpush.bf16.msra.mxu0 (%p270_p1), %v801_v62  ;;  %v799_v16 = vld [vmem:[%s1402_s4 + $0x8] sm:$0xff] (%p270_p1) }
 0x1d5   : > { %v881_v20 = vpop.eup %880 }
 0x1d6   : > { %v416_v21 = vadd.f32 1.0, %v881_v20  ;;  %v883_v22 = vpop.eup %882 }
 0x1d7   : > { %v379_v23 = vadd.f32 1.0, %v883_v22 }
 0x1d8   : > { %884 = vrcp.f32 %v416_v21  ;;  %v428_v32 = vand.u32 2147483648, %v416_v21  ;;  %vm422_vm3 = vweird.f32 %v416_v21  ;;  %v426_v33 = vand.u32 2147483647, %v416_v21  ;;  %510 = vmatpush.bf16.msra.mxu0 (%p270_p1), %v800_v63 }
 0x1d9   : > { %886 = vrcp.f32 %v379_v23  ;;  %v391_v44 = vand.u32 2147483648, %v379_v23  ;;  %vm385_vm7 = vweird.f32 %v379_v23  ;;  %v389_v45 = vand.u32 2147483647, %v379_v23 }
 0x1da   : > { %v429_v36 = vor.u32 1.1754944e-38, %v428_v32  ;;  %vm427_vm5 = vcmp.eq.f32.partialorder %v426_v33, 8.507059e+37 }
 0x1db   : > { %v392_v47 = vor.u32 1.1754944e-38, %v391_v44  ;;  %vm390_vm9 = vcmp.eq.f32.partialorder %v389_v45, 8.507059e+37 }
 0x1dc   : > { %398 = vrot.lane.b32.xlu1 %v879_v17, %s1103_s15  ;;  %511 = vmatpush.bf16.msra.mxu0 (%p270_p1), %v799_v16 }
 0x1de   : > { %v885_v24 = vpop.eup %884 }
 0x1df   : > { %v418_v25 = vmul.f32 %v885_v24, %v416_v21  ;;  %v887_v27 = vpop.eup %886  ;;  %vm423_vm2 = vweird.f32 %v885_v24  ;;  %v894_v21 = vld [vmem:[#allocation11] ss:$0 sm:$0xff] (%p270_p1) }
 0x1e0   : > { %v381_v29 = vmul.f32 %v887_v27, %v379_v23  ;;  %vm424_vm4 = vmor %vm422_vm3, %vm423_vm2  ;;  %vm386_vm6 = vweird.f32 %v887_v27  ;;  %512 = vmatpush.bf16.msra.mxu0 (%p270_p1), %v798_v0 }
 0x1e1   : > { %v419_v26 = vsub.f32 1.0, %v418_v25  ;;  %vm387_vm8 = vmor %vm385_vm7, %vm386_vm6 }
 0x1e2   : > { %v382_v31 = vsub.f32 1.0, %v381_v29 }
 0x1e3   : > { %v420_v28 = vmul.f32 %v885_v24, %v419_v26 }
 0x1e4   : > { %v383_v35 = vmul.f32 %v887_v27, %v382_v31 }
 0x1e5   : > { %v421_v30 = vadd.f32 %v885_v24, %v420_v28 }
 0x1e6   : > { %v384_v43 = vadd.f32 %v887_v27, %v383_v35 }
 0x1e7   : > { %v425_v34 = vsel %vm424_vm4, %v885_v24, %v421_v30 }
 0x1e8   : > { %v430_v38 = vsel %vm427_vm5, %v429_v36, %v425_v34  ;;  %v388_v46 = vsel %vm387_vm8, %v887_v27, %v384_v43 }
 0x1e9   : > { %v393_v49 = vsel %vm390_vm9, %v392_v47, %v388_v46  ;;  %v433_v51 = vmul.f32 %v1077_v40, %v430_v38 }
 0x1ea   : > { %v396_v53 = vmul.f32 %v1081_v41, %v393_v49 }
 0x246   : > { %v436_v37 = vpop.permute.xlu1 %435 }
 0x247   : > { %v438_v42 = vmul.f32 %v436_v37, %v430_v38 }
 0x249   : > { %440 = vrot.lane.b32.xlu2 %v438_v42, %s1102_s2 }
 0x24e   : > { %v399_v48 = vpop.permute.xlu1 %398 }
 0x24f   : > { %v401_v50 = vmul.f32 %v399_v48, %v393_v49 }
 0x251   : > { %403 = vrot.lane.b32.xlu2 %v401_v50, %s1102_s2 }
 0x2a3   : > { %v441_v52 = vpop.permute.xlu2 %440 }
 0x2a4   : > { %v443_v40 = vadd.f32 %v441_v52, %v433_v51  }
 0x2a6   : > { %888 = vtanh.f32 %v443_v40  ;;  %v893_v40 = vld [vmem:[#allocation9] ss:$0 sm:$0xff] (%p270_p1) }
 0x2ab   : > { %v404_v54 = vpop.permute.xlu2 %403 }
 0x2ac   : > { %v889_v55 = vpop.eup %888  ;;  %v406_v41 = vadd.f32 %v404_v54, %v396_v53  }
 0x2ad   : > { %446 = vrot.lane.b32.xlu0 %v889_v55, %s1103_s15 }
 0x2ae   : > { %890 = vtanh.f32 %v406_v41 }
 0x2b4   : > { %v891_v56 = vpop.eup %890 }
 0x2b5   : > { %409 = vrot.lane.b32.xlu1 %v891_v56, %s1103_s15 }
 0x31f   : > { %v447_v58 = vpop.permute.xlu0 %446 }
 0x320   : > { %v449_v42 = vmul.f32 %v447_v58, %v430_v38  }
 0x322   : > { %v454_v59 = vsel %vm453_vm10, %v449_v42, %v1073_v39  }
 0x323   : > { %v1409_v39 = vmov %v454_v59 }
 0x324   :  { %v806_v39 = vld [vmem:[%s1406_s8] sm:$0xff] (%p270_p1) }
 0x325   :  { %604 = vmatpush.bf16.msra.mxu2 (%p270_p1), %v806_v39 }
 0x326   :  { %272 = sbr.rel (!%p270_p1) target bundleno = 206 (0xce), region = 89 }
 0x327   : > { %v410_v60 = vpop.permute.xlu1 %409 }
 0x328   : > { %v412_v61 = vmul.f32 %v410_v60, %v393_v49  }
 0x32a   : > { %v1410_v43 = vmov %v412_v61  ;;  %456 = vrot.lane.b32.xlu0 (%p270_p1), %v412_v61, %s1104_s3 }
 0x332   :  { %460 = vrot.lane.b32.xlu0 %v454_v59, %s1105_s26 }
 0x39c   :  { %v457_v3 = vpop.permute.xlu0 %456 }
 0x3a4   :  { %v461_v4 = vpop.permute.xlu0 %460 }
 0x3a5   :  { %v464_v5 = vsel %vm287_vm1, %v457_v3, %v461_v4 }
 0x3a6   :  { %v465_v6 = vpack.c.bf16 %v464_v5, %v464_v5 }
 0x3a8   :  { %753 = vmatmul.msk.bf16.vlgmr.msra.gmra.mxu0 %vm173_vm0, %v465_v6 }
 0x425   :  { %v514_v10 = vpop.f32.mrf.mxu0 }
 0x426   :  { %v515_v11 = vadd.f32 %v892_v9, %v514_v10 }
 0x428   :  { %v518_v12 = vmax.f32 %v515_v11, 0.0 }
 0x42a   :  { %v519_v13 = vpack.c.bf16 %v518_v12, %v518_v12 }
 0x42c   :  { %770 = vmatmul.msk.bf16.vlgmr.msra.gmra.mxu1 %vm173_vm0, %v519_v13 }
 0x42d   :  { %v516_v14 = vpop.f32.mrf.mxu0 }
 0x4a9   :  { %v568_v41 = vpop.f32.mrf.mxu1 }
 0x4aa   :  { %v569_v17 = vadd.f32 %v893_v40, %v568_v41 }
 0x4ac   :  { %v572_v18 = vmax.f32 %v569_v17, 0.0 }
 0x4ae   :  { %v573_v19 = vpack.c.bf16 %v572_v18, %v572_v18 }
 0x4b0   :  { %779 = vmatmul.msk.bf16.vlgmr.msra.gmra.mxu2 %vm287_vm1, %v573_v19 }
 0x4b1   :  { %v570_v20 = vpop.f32.mrf.mxu1 }
 0x533   :  { %v606_v22 = vpop.f32.mrf.mxu2 }
 0x534   :  { %v607_v23 = vadd.f32 %v894_v21, %v606_v22 }
 0x536   :  { %611 = vst.msk [vmem:[#allocation12] sm:$0xff] %vm610_vm11, %v607_v23 }
 0x537   :  { %622 = dma.vmem_to_hbm [thread:$0]  %s618_s18, 128, %s620_s21, [#allocation5]  }
 0x53b   :  { %v608_v24 = vpop.f32.mrf.mxu2 }
 0x53c   :  { %1069 = dma.done.wait [#allocation5], 128  }
 0x53d   :  { %1070 = vsyncadd [#allocation5], 4294967168 }
 0x53e   :  { %627 = vsyncpa [#allocation4], 1 }
 0x53f   :  { %628 = vsyncpa [#allocation7], 1 }
 0x540   :  { %629 = vsyncpa [#allocation10], 1 }
 0x541   :  { %630 = vsyncpa [#allocation5], 1 }

// kernel: bilstm_forward.2
= control target key start
LH: loop header
LB: loop body
LE: loop exit
PB: predicated region body
PF: predicated region fallthrough
CT: control target
= control target key end

     0   :  { %vm48_vm0 = vcmask 130048   ;;  %s779_s1 = inlined_call_operand.vmem [shape: bf16[16,256], index: 1, kind: input, shape index: {}]   ;;  %s780_s4 = inlined_call_operand.vmem [shape: f32[8,8,64], index: 4, kind: output, shape index: {}]   ;;  %s781_s0 = inlined_call_operand.vmem [shape: f32[8,8,16], index: 0, kind: input, shape index: {}]   ;;  %s782_s3 = inlined_call_operand.vmem [shape: f32[1,256], index: 3, kind: input, shape index: {}]   ;;  %s783_s2 = inlined_call_operand.vmem [shape: bf16[64,256], index: 2, kind: input, shape index: {}]  }
   0x1   :  { %v369_v0 = vld [vmem:[%s779_s1] sm:$0xf]  ;;  %v426_v1 = vld [vmem:[%s779_s1 + $0x4] sm:$0xf0]  ;;  %v425_v2 = vld [vmem:[%s779_s1 + $0x4] sm:$0xf] }
   0x2   :  { %v370_v3 = vor.u32 %v426_v1, %v369_v0  ;;  %v371_v4 = vld [vmem:[%s779_s1 + $0x8] sm:$0xf0]  ;;  %v18_v5 = vld [vmem:[%s781_s0] sm:$0xff]  ;;  %v20_v12 = vld [vmem:[%s781_s0 + $0x10] sm:$0xff] }
   0x3   :  { %v19_v6 = vld [vmem:[%s781_s0 + $0x8] sm:$0xff]  ;;  %v374_v7 = vor.u32 %v425_v2, %v371_v4  ;;  %v22_v9 = vld [vmem:[%s781_s0 + $0x20] sm:$0xff]  ;;  %v21_v13 = vld [vmem:[%s781_s0 + $0x18] sm:$0xff] }
   0x4   :  { %v26_v8 = vpack.c.bf16 %v19_v6, %v18_v5  ;;  %v23_v10 = vld [vmem:[%s781_s0 + $0x28] sm:$0xff]  ;;  %68 = vmatpush.bf16.msra.mxu0 %v370_v3  ;;  %437 = vmatpush.bf16.msra.mxu2 %v370_v3  ;;  %v24_v14 = vld [vmem:[%s781_s0 + $0x30] sm:$0xff]  ;;  %v25_v15 = vld [vmem:[%s781_s0 + $0x38] sm:$0xff]  ;;  %v27_v16 = vpack.c.bf16 %v21_v13, %v20_v12  ;;  %v701_v5 = vmov 0.0   ;;  %v703_v6 = vmov 0.0  }
   0x5   :  { %v28_v11 = vpack.c.bf16 %v23_v10, %v22_v9  ;;  %97 = vmatpush.bf16.msra.mxu1 %v374_v7  ;;  %438 = vmatpush.bf16.msra.mxu3 %v374_v7  ;;  %v29_v17 = vpack.c.bf16 %v25_v15, %v24_v14  ;;  %v32_v18 = vld [vmem:[%s782_s3] sm:$0x3]  ;;  %v617_v25 = vld [vmem:[%s783_s2 + $0x4] sm:$0xf]  ;;  %v627_v27 = vld [vmem:[%s783_s2 + $0x8] sm:$0xf0] }
   0x6   :  { %v34_v19 = vperm.slane %v32_v18, 0  ;;  %v611_v20 = vperm.slane %v32_v18, 1  ;;  %v622_v26 = vld [vmem:[%s783_s2] sm:$0xf]  ;;  %v632_v28 = vld [vmem:[%s783_s2 + $0x4] sm:$0xf0] }
   0x7   :  { %375 = vmatmul.msk.bf16.vlgmr.msra.gmra.mxu0 %vm48_vm0, %v26_v8  ;;  %377 = vmatmul.msk.bf16.vlgmr.msra.gmra.mxu2 %vm48_vm0, %v28_v11  ;;  %v637_v29 = vld [vmem:[%s783_s2 + $0x14] sm:$0xf]  ;;  %v642_v30 = vld [vmem:[%s783_s2 + $0x10] sm:$0xf]  ;;  %v647_v31 = vld [vmem:[%s783_s2 + $0x18] sm:$0xf0] }
   0x8   :  { %379 = vmatmul.msk.bf16.vlgmr.msra.gmra.mxu1 %vm48_vm0, %v26_v8  ;;  %381 = vmatmul.msk.bf16.vlgmr.msra.gmra.mxu3 %vm48_vm0, %v28_v11  ;;  %v652_v32 = vld [vmem:[%s783_s2 + $0x14] sm:$0xf0]  ;;  %v657_v33 = vld [vmem:[%s783_s2 + $0x24] sm:$0xf]  ;;  %v662_v34 = vld [vmem:[%s783_s2 + $0x20] sm:$0xf] }
   0x9   :  { %v667_v36 = vld [vmem:[%s783_s2 + $0x28] sm:$0xf0]  ;;  %v672_v37 = vld [vmem:[%s783_s2 + $0x24] sm:$0xf0]  ;;  %v677_v38 = vld [vmem:[%s783_s2 + $0x34] sm:$0xf] }
   0xa   :  { %v682_v41 = vld [vmem:[%s783_s2 + $0x30] sm:$0xf]  ;;  %v687_v42 = vld [vmem:[%s783_s2 + $0x38] sm:$0xf0]  ;;  %v692_v43 = vld [vmem:[%s783_s2 + $0x34] sm:$0xf0] }
   0xb   :  { %v705_v7 = vmov 0.0   ;;  %v707_v8 = vmov 0.0   ;;  %s709_s2 = smov 0  }
  0x17   :  { %376 = vmatmul.msk.bf16.gmra.mxu0 %vm48_vm0, %v27_v16  ;;  %378 = vmatmul.msk.bf16.gmra.mxu2 %vm48_vm0, %v29_v17 }
  0x18   :  { %380 = vmatmul.msk.bf16.gmra.mxu1 %vm48_vm0, %v27_v16  ;;  %382 = vmatmul.msk.bf16.gmra.mxu3 %vm48_vm0, %v29_v17 }
  0x84   :  { %v70_v21 = vpop.f32.mrf.mxu0 }
  0x85   :  { %v71_v22 = vadd.f32 %v70_v21, %v34_v19  ;;  %v99_v23 = vpop.f32.mrf.mxu1 }
  0x86   :  { %v100_v24 = vadd.f32 %v99_v23, %v611_v20 }
  0x87   :  { %119 = vst [vmem:[#allocation2] sm:$0xff] %v71_v22 }
  0x88   :  { %120 = vst [vmem:[#allocation2 + $0x8] sm:$0xff] %v100_v24 }
  0x8a   :  { %v80_v35 = vpop.f32.mrf.mxu2 }
  0x8b   :  { %v81_v39 = vadd.f32 %v80_v35, %v34_v19  ;;  %v109_v40 = vpop.f32.mrf.mxu3 }
  0x8c   :  { %v110_v44 = vadd.f32 %v109_v40, %v611_v20  ;;  %v72_v45 = vpop.f32.mrf.mxu0 }
  0x8d   :  { %127 = vst [vmem:[#allocation2 + $0x40] sm:$0xff] %v81_v39  ;;  %v73_v46 = vadd.f32 %v72_v45, %v34_v19  ;;  %v101_v47 = vpop.f32.mrf.mxu1 }
  0x8e   :  { %128 = vst [vmem:[#allocation2 + $0x48] sm:$0xff] %v110_v44  ;;  %v102_v48 = vadd.f32 %v101_v47, %v611_v20 }
  0x8f   :  { %121 = vst [vmem:[#allocation2 + $0x10] sm:$0xff] %v73_v46 }
  0x90   :  { %122 = vst [vmem:[#allocation2 + $0x18] sm:$0xff] %v102_v48 }
  0x92   :  { %v82_v49 = vpop.f32.mrf.mxu2 }
  0x93   :  { %v83_v50 = vadd.f32 %v82_v49, %v34_v19  ;;  %v111_v51 = vpop.f32.mrf.mxu3 }
  0x94   :  { %v112_v52 = vadd.f32 %v111_v51, %v611_v20  ;;  %v75_v53 = vpop.f32.mrf.mxu0 }
  0x95   :  { %129 = vst [vmem:[#allocation2 + $0x50] sm:$0xff] %v83_v50  ;;  %v76_v54 = vadd.f32 %v75_v53, %v34_v19  ;;  %v104_v55 = vpop.f32.mrf.mxu1 }
  0x96   :  { %130 = vst [vmem:[#allocation2 + $0x58] sm:$0xff] %v112_v52  ;;  %v105_v56 = vadd.f32 %v104_v55, %v611_v20 }
  0x97   :  { %123 = vst [vmem:[#allocation2 + $0x20] sm:$0xff] %v76_v54 }
  0x98   :  { %124 = vst [vmem:[#allocation2 + $0x28] sm:$0xff] %v105_v56 }
  0x9a   :  { %v85_v57 = vpop.f32.mrf.mxu2 }
  0x9b   :  { %v86_v58 = vadd.f32 %v85_v57, %v34_v19  ;;  %v114_v59 = vpop.f32.mrf.mxu3 }
  0x9c   :  { %v115_v60 = vadd.f32 %v114_v59, %v611_v20  ;;  %v77_v61 = vpop.f32.mrf.mxu0 }
  0x9d   :  { %131 = vst [vmem:[#allocation2 + $0x60] sm:$0xff] %v86_v58  ;;  %v78_v62 = vadd.f32 %v77_v61, %v34_v19  ;;  %v106_v63 = vpop.f32.mrf.mxu1 }
  0x9e   :  { %132 = vst [vmem:[#allocation2 + $0x68] sm:$0xff] %v115_v60  ;;  %v107_v0 = vadd.f32 %v106_v63, %v611_v20 }
  0x9f   :  { %125 = vst [vmem:[#allocation2 + $0x30] sm:$0xff] %v78_v62 }
  0xa0   :  { %126 = vst [vmem:[#allocation2 + $0x38] sm:$0xff] %v107_v0 }
  0xa2   :  { %v87_v1 = vpop.f32.mrf.mxu2 }
  0xa3   :  { %v88_v2 = vadd.f32 %v87_v1, %v34_v19  ;;  %v116_v3 = vpop.f32.mrf.mxu3 }
  0xa4   :  { %v117_v4 = vadd.f32 %v116_v3, %v611_v20 }
  0xa5   :  { %133 = vst [vmem:[#allocation2 + $0x70] sm:$0xff] %v88_v2 }
  0xa6   :  { %134 = vst [vmem:[#allocation2 + $0x78] sm:$0xff] %v117_v4 }
  0xa7 LB: > { %v410_v9 = vor.u32 %v692_v43, %v682_v41  ;;  %v414_v10 = vor.u32 %v677_v38, %v687_v42  ;;  %s537_s16 = smov 32   ;;  %s538_s17 = smov 64   ;;  %v402_v11 = vor.u32 %v672_v37, %v662_v34  ;;  %v406_v12 = vor.u32 %v657_v33, %v667_v36  ;;  %s535_s2 = sphi %s709_s2, %s148_s2   ;;  %v531_v8 = vphi %v707_v8, %v287_v8   ;;  %v527_v7 = vphi %v705_v7, %v324_v7   ;;  %v523_v6 = vphi %v703_v6, %v281_v6   ;;  %v519_v5 = vphi %v701_v5, %v318_v5  }
  0xa8   : > { %154 = vrot.lane.b32.xlu0 %v531_v8, %s537_s16  ;;  %v394_v13 = vor.u32 %v652_v32, %v642_v30  ;;  %v398_v14 = vor.u32 %v637_v29, %v647_v31  ;;  %v386_v15 = vor.u32 %v632_v28, %v622_v26  ;;  %v390_v16 = vor.u32 %v617_v25, %v627_v27  ;;  %s417_s3 = sshll.u32 %s535_s2, 3  ;;  %s235_s19 = ssub.s32 7, %s535_s2 }
  0xa9   : > { %212 = vmatpush.bf16.msra.mxu0 %v410_v9  ;;  %225 = vmatpush.bf16.msra.mxu1 %v414_v10  ;;  %vm161_vm1 = vcmask 261120   ;;  %vm204_vm2 = vcmask 523264   ;;  %s237_s18 = sshra.s32 %s417_s3, 3  ;;  %s745_s21 = sshll.u32 %s235_s19, 3  ;;  %vm336_vm11 = vcmask 523520  }
  0xaa   : > { %s435_s20 = sshll.u32 %s237_s18, 4  ;;  %s244_s22 = sshra.s32 %s745_s21, 3 }
  0xab   : > { %s241_s23 = scalar_lea.vmem [#allocation2], %s435_s20  ;;  %s436_s24 = sshll.u32 %s244_s22, 4 }
  0xac   : > { %s248_s25 = scalar_lea.vmem [#allocation2], %s436_s24  ;;  %s329_s28 = scalar_lea.vmem %s780_s4, %s417_s3 }
  0xad   : > { %213 = vmatpush.bf16.msra.mxu0 %v402_v11  ;;  %226 = vmatpush.bf16.msra.mxu1 %v406_v12  ;;  %v242_v21 = vld [vmem:[%s241_s23] sm:$0xff]  ;;  %v249_v35 = vld [vmem:[%s248_s25 + $0x8] sm:$0xff]  ;;  %s335_s1 = scalar_lea.vmem %s780_s4, %s745_s21  ;;  %s148_s2 = sadd.s32 1, %s535_s2  }
  0xae   : > { %p145_p0 = scmp.ge.s32.totalorder %s148_s2, 8  }
  0xb0   : > { %158 = vrot.lane.b32.xlu0 %v527_v7, %s538_s17 }
  0xb1   : > { %214 = vmatpush.bf16.msra.mxu0 %v394_v13  ;;  %227 = vmatpush.bf16.msra.mxu1 %v398_v14 }
  0xb5   : > { %215 = vmatpush.bf16.msra.mxu0 %v386_v15  ;;  %228 = vmatpush.bf16.msra.mxu1 %v390_v16 }
 0x11a   : > { %v155_v17 = vpop.permute.xlu0 %154 }
 0x122   : > { %v159_v18 = vpop.permute.xlu0 %158 }
 0x123   : > { %v162_v19 = vsel %vm161_vm1, %v155_v17, %v159_v18 }
 0x124   : > { %v163_v20 = vpack.c.bf16 %v162_v19, %v162_v19 }
 0x126   : > { %415 = vmatmul.msk.bf16.vlgmr.msra.gmra.mxu0 %vm204_vm2, %v163_v20  ;;  %416 = vmatmul.msk.bf16.vlgmr.msra.gmra.mxu1 %vm204_vm2, %v163_v20 }
 0x1a3   : > { %v217_v22 = vpop.f32.mrf.mxu0  ;;  %v230_v23 = vpop.f32.mrf.mxu1 }
 0x1a4   : > { %v243_v24 = vadd.f32 %v242_v21, %v217_v22  ;;  %v250_v39 = vadd.f32 %v249_v35, %v230_v23 }
 0x1a6   : > { %481 = vtanh.f32 %v243_v24  ;;  %v423_v47 = vmul.f32 -1.442695, %v243_v24  ;;  %v424_v48 = vmul.f32 -1.442695, %v250_v39 }
 0x1a7   : > { %483 = vtanh.f32 %v250_v39 }
 0x1a8   : > { %485 = vpow2.f32 %v423_v47 }
 0x1a9   : > { %487 = vpow2.f32 %v424_v48 }
 0x1ab   : > { %v219_v40 = vpop.f32.mrf.mxu0  ;;  %v232_v44 = vpop.f32.mrf.mxu1 }
 0x1ac   : > { %v482_v45 = vpop.eup %481 }
 0x1ad   : > { %273 = vrot.lane.b32.xlu1 %v482_v45, %s538_s17  ;;  %v484_v46 = vpop.eup %483 }
 0x1ae   : > { %v486_v49 = vpop.eup %485 }
 0x1af   : > { %v254_v50 = vadd.f32 1.0, %v486_v49  ;;  %v488_v51 = vpop.eup %487 }
 0x1b0   : > { %v291_v52 = vadd.f32 1.0, %v488_v51 }
 0x1b1   : > { %489 = vrcp.f32 %v254_v50  ;;  %v266_v61 = vand.u32 2147483648, %v254_v50  ;;  %vm260_vm4 = vweird.f32 %v254_v50  ;;  %v264_v62 = vand.u32 2147483647, %v254_v50 }
 0x1b2   : > { %491 = vrcp.f32 %v291_v52  ;;  %v303_v8 = vand.u32 2147483648, %v291_v52  ;;  %vm297_vm8 = vweird.f32 %v291_v52  ;;  %v301_v9 = vand.u32 2147483647, %v291_v52 }
 0x1b3   : > { %v267_v1 = vor.u32 1.1754944e-38, %v266_v61  ;;  %vm265_vm6 = vcmp.eq.f32.partialorder %v264_v62, 8.507059e+37 }
 0x1b4   : > { %v304_v11 = vor.u32 1.1754944e-38, %v303_v8  ;;  %vm302_vm10 = vcmp.eq.f32.partialorder %v301_v9, 8.507059e+37 }
 0x1b5   : > { %310 = vrot.lane.b32.xlu1 %v484_v46, %s538_s17 }
 0x1b7   : > { %v490_v53 = vpop.eup %489 }
 0x1b8   : > { %v256_v54 = vmul.f32 %v490_v53, %v254_v50  ;;  %v492_v56 = vpop.eup %491  ;;  %vm261_vm3 = vweird.f32 %v490_v53 }
 0x1b9   : > { %v293_v58 = vmul.f32 %v492_v56, %v291_v52  ;;  %vm262_vm5 = vmor %vm260_vm4, %vm261_vm3  ;;  %vm298_vm7 = vweird.f32 %v492_v56 }
 0x1ba   : > { %v257_v55 = vsub.f32 1.0, %v256_v54  ;;  %vm299_vm9 = vmor %vm297_vm8, %vm298_vm7 }
 0x1bb   : > { %v294_v60 = vsub.f32 1.0, %v293_v58 }
 0x1bc   : > { %v258_v57 = vmul.f32 %v490_v53, %v257_v55 }
 0x1bd   : > { %v295_v0 = vmul.f32 %v492_v56, %v294_v60 }
 0x1be   : > { %v259_v59 = vadd.f32 %v490_v53, %v258_v57 }
 0x1bf   : > { %v296_v7 = vadd.f32 %v492_v56, %v295_v0 }
 0x1c0   : > { %v263_v63 = vsel %vm262_vm5, %v490_v53, %v259_v59 }
 0x1c1   : > { %v268_v3 = vsel %vm265_vm6, %v267_v1, %v263_v63  ;;  %v300_v10 = vsel %vm299_vm9, %v492_v56, %v296_v7 }
 0x1c2   : > { %v305_v12 = vsel %vm302_vm10, %v304_v11, %v300_v10  ;;  %v271_v15 = vmul.f32 %v523_v6, %v268_v3 }
 0x1c3   : > { %v308_v17 = vmul.f32 %v519_v5, %v305_v12 }
 0x21f   : > { %v274_v2 = vpop.permute.xlu1 %273 }
 0x220   : > { %v276_v4 = vmul.f32 %v274_v2, %v268_v3 }
 0x222   : > { %278 = vrot.lane.b32.xlu2 %v276_v4, %s537_s16 }
 0x227   : > { %v311_v13 = vpop.permute.xlu1 %310 }
 0x228   : > { %v313_v14 = vmul.f32 %v311_v13, %v305_v12 }
 0x22a   : > { %315 = vrot.lane.b32.xlu2 %v313_v14, %s537_s16 }
 0x27c   : > { %v279_v16 = vpop.permute.xlu2 %278 }
 0x27d   : > { %v281_v6 = vadd.f32 %v279_v16, %v271_v15  }
 0x27f   : > { %493 = vtanh.f32 %v281_v6 }
 0x284   : > { %v316_v18 = vpop.permute.xlu2 %315 }
 0x285   : > { %v494_v19 = vpop.eup %493  ;;  %v318_v5 = vadd.f32 %v316_v18, %v308_v17  }
 0x286   : > { %284 = vrot.lane.b32.xlu0 %v494_v19, %s538_s17 }
 0x287   : > { %495 = vtanh.f32 %v318_v5 }
 0x28d   : > { %v496_v20 = vpop.eup %495 }
 0x28e   : > { %321 = vrot.lane.b32.xlu1 %v496_v20, %s538_s17 }
 0x2f8   : > { %v285_v21 = vpop.permute.xlu0 %284 }
 0x2f9   : > { %v287_v8 = vmul.f32 %v285_v21, %v268_v3  }
 0x2fb   : > { %326 = vrot.lane.b32.xlu2 %v287_v8, %s537_s16 }
 0x300   : > { %v322_v22 = vpop.permute.xlu1 %321 }
 0x301   : > { %v324_v7 = vmul.f32 %v322_v22, %v305_v12  }
 0x303   : > { %332 = vrot.lane.b32.xlu0 %v324_v7, %s538_s17 }
 0x355   : > { %v327_v23 = vpop.permute.xlu2 %326 }
 0x356   : > { %330 = vst.msk [vmem:[%s329_s28] sm:$0xff] %vm161_vm1, %v327_v23 }
 0x372   :  { %147 = sbr.rel (!%p145_p0) target bundleno = 167 (0xa7), region = 47 }
 0x375   : > { %v333_v24 = vpop.permute.xlu0 %332 }
 0x376   : > { %337 = vst.msk [vmem:[%s335_s1] sm:$0xff] %vm336_vm11, %v333_v24 }

</bundles_post_ra>
